<compile_context>
chip_gen: v5e
topology: v5e:2x2
jax: 0.10.0
libtpu: 0.0.40
codegen_flags: <defaults>
</compile_context>

<pallas_src>
import functools

import numpy as np
import jax
import jax.numpy as jnp
from jax import lax
from jax.experimental import pallas as pl
from jax.experimental.pallas import tpu as pltpu

NEG_SLOPE = 0.2          # PyG GATConv default negative_slope
NODES_PER_GRAPH = 7      # hard-coded by the reference Net (x.view(N/7, -1))
_MASK = -1e30
_LANES = 128


def _round_up(v, m):
    return (v + m - 1) // m * m


# --------------------------------------------------------------------------
# Fused Pallas kernel: the whole Net.forward (one program, everything in VMEM)
# --------------------------------------------------------------------------
def _net_kernel(x_ref, bias_ref, slab_ref, o_ref, *, layout, n_pad):
    """Whole forward pass.

    x_ref    : [Np, 19]   node features (zero-padded rows beyond the real N)
    bias_ref : [Np, Np]   additive attention mask: 0 on edges / self-loops,
                          -1e30 elsewhere (denominator >= 1, never 0/0)
    slab_ref : [R, 128]   all parameters packed into one 8-row-aligned slab
    o_ref    : [1, G]     lane-dense output row (graphs on the lane axis)
    """

    def get(name):
        r0, r, c = layout[name]            # static Python ints -> static slice
        return slab_ref[r0:r0 + r, 0:c]

    adj_bias = bias_ref[...]                                   # [Np, Np]
    ones = jnp.ones((n_pad, 1), jnp.float32)                   # hoisted once

    def gat(x, l, heads, out_ch):
        w, a_s, a_d, b = get(f"w{l}"), get(f"as{l}"), get(f"ad{l}"), get(f"b{l}")
        h = jnp.dot(x, w, preferred_element_type=jnp.float32)            # [Np, H*C]
        # packed block-diag attention: 2 tiny MXU matmuls replace 2*H XLU
        # cross-lane reductions; ss is produced lane-major (no transpose).
        sd = jnp.dot(h, a_d, preferred_element_type=jnp.float32)         # [Np, H]
        ss = lax.dot_general(a_s, h, (((1,), (1,)), ((), ())),
                             preferred_element_type=jnp.float32)         # [H, Np]
        # ones column fused in => softmax denominator falls out of the same
        # MXU matmul as the aggregation (no XLU row-sum per head).
        h_aug = jnp.concatenate([h, ones], axis=-1)                      # [Np, H*C+1]
        outs = []
        for hd in range(heads):
            logits = sd[:, hd:hd + 1] + ss[hd:hd + 1, :]                 # [Np, Np]
            logits = jnp.where(logits > 0, logits, NEG_SLOPE * logits)   # leaky_relu
            logits = logits + adj_bias                                   # mask non-edges
            m = jnp.max(logits, axis=-1, keepdims=True)
            p = jnp.exp(logits - m)                   # masked entries underflow to 0
            res = jnp.dot(p, h_aug, preferred_element_type=jnp.float32)  # [Np, H*C+1]
            denom = res[:, heads * out_ch:heads * out_ch + 1]            # row-sum of p (>= 1)
            # deferred softmax normalization: one EUP reciprocal + N*C muls
            # (approx vrcp, ~2^-12 rel err; use approx=False for bitwise refs)
            outs.append(res[:, hd * out_ch:(hd + 1) * out_ch]
                        * pl.reciprocal(denom, approx=True))
        out = outs[0] if heads == 1 else jnp.concatenate(outs, axis=-1)
        return jnp.maximum(out + b, 0.0)              # GATConv bias + fused F.relu

    x = x_ref[...]                                                       # [Np, 19]
    x = gat(x, 1, heads=2, out_ch=5)                                     # [Np, 10]
    x = gat(x, 2, heads=2, out_ch=2)                                     # [Np, 4]
    x = gat(x, 3, heads=1, out_ch=2)                                     # [Np, 2]

    # x.view(G, 14) @ lin1 == per-node position-dependent linear + within-graph
    # sum pooling (exact rewrite, no in-kernel reshape).  TN dot_generals keep
    # the result lane-major so the final store is one lane-dense [1, G] row.
    pre = x[:, 0:1] * get("lw1n0") + x[:, 1:2] * get("lw1n1")            # [Np, 7]
    h1t = lax.dot_general(pre, get("gsel"), (((0,), (1,)), ((), ())),
                          preferred_element_type=jnp.float32)            # [7, G]
    h1t = jnp.maximum(h1t + get("lb1t"), 0.0)                            # relu(lin1)
    o_ref[...] = (lax.dot_general(get("lw2"), h1t, (((0,), (0,)), ((), ())),
                                  preferred_element_type=jnp.float32)
                  + get("lb2"))                                          # lin2 -> [1, G]


_VMEM = pl.BlockSpec(memory_space=pltpu.MemorySpace.VMEM)


# --------------------------------------------------------------------------
# Host-side (one-time) preprocessing: NumPy only, nothing in the hot path
# --------------------------------------------------------------------------
def _build_adj_bias(edge_index, n, n_pad):
    """Additive mask: 0 on dst<-src edges and self-loops, -1e30 elsewhere."""
    edge_index = np.asarray(edge_index)
    bias = np.full((n_pad, n_pad), _MASK, np.float32)
    bias[edge_index[1], edge_index[0]] = 0.0            # message src -> dst
    diag = np.arange(n_pad)
    bias[diag, diag] = 0.0                               # add_self_loops=True
    return bias                                          # (pad rows too: denom>=1)


def _pack_attention(att_src, att_dst):
    """Block-diagonal packing so per-head dot products become one matmul."""
    att_src = np.asarray(att_src, np.float32)
    att_dst = np.asarray(att_dst, np.float32)
    heads, out_ch = att_src.shape
    a_src = np.zeros((heads, heads * out_ch), np.float32)
    a_dst = np.zeros((heads * out_ch, heads), np.float32)
    for hd in range(heads):
        a_src[hd, hd * out_ch:(hd + 1) * out_ch] = att_src[hd]
        a_dst[hd * out_ch:(hd + 1) * out_ch, hd] = att_dst[hd]
    return a_src, a_dst


def _mlp_constants(lw1, n, n_pad):
    """Rewrite view(G,14)@lin1 as per-node weights + graph pooling matrix."""
    lw1 = np.asarray(lw1, np.float32)                    # [14, 7]
    pos = np.arange(n) % NODES_PER_GRAPH
    w1n0 = np.zeros((n_pad, lw1.shape[1]), np.float32)
    w1n1 = np.zeros((n_pad, lw1.shape[1]), np.float32)
    w1n0[:n] = lw1[2 * pos, :]                           # channel-0 weight rows
    w1n1[:n] = lw1[2 * pos + 1, :]                       # channel-1 weight rows
    g = n // NODES_PER_GRAPH
    gsel = np.zeros((g, n_pad), np.float32)
    gsel[np.arange(n) // NODES_PER_GRAPH, np.arange(n)] = 1.0
    return w1n0, w1n1, gsel


def _pack_slab(named):
    """Pack all params into one [R, 128] f32 slab; each param 8-row aligned."""
    layout, blocks, r0 = {}, [], 0
    for name, a in named:
        a = np.asarray(a, np.float32)
        if a.ndim == 1:
            a = a[None, :]
        r, c = a.shape
        assert c <= _LANES, name
        rp = _round_up(r, 8)
        blk = np.zeros((rp, _LANES), np.float32)
        blk[:r, :c] = a
        blocks.append(blk)
        layout[name] = (r0, r, c)
        r0 += rp
    return np.concatenate(blocks, axis=0), layout


def build_net(params, edge_index, n):
    """One-time prep (slab pack + adjacency); returns jitted forward(x)->[G]."""
    assert n % NODES_PER_GRAPH == 0
    g = n // NODES_PER_GRAPH
    n_pad = _round_up(n, 8)                              # sublane alignment

    as1, ad1 = _pack_attention(params["as1"], params["ad1"])
    as2, ad2 = _pack_attention(params["as2"], params["ad2"])
    as3, ad3 = _pack_attention(params["as3"], params["ad3"])
    lw1n0, lw1n1, gsel = _mlp_constants(params["lw1"], n, n_pad)

    named = [
        ("w1", params["w1"]), ("as1", as1), ("ad1", ad1), ("b1", params["b1"]),
        ("w2", params["w2"]), ("as2", as2), ("ad2", ad2), ("b2", params["b2"]),
        ("w3", params["w3"]), ("as3", as3), ("ad3", ad3), ("b3", params["b3"]),
        ("lw1n0", lw1n0), ("lw1n1", lw1n1), ("gsel", gsel),
        ("lb1t", np.asarray(params["lb1"], np.float32).reshape(-1, 1)),
        ("lw2", params["lw2"]), ("lb2", params["lb2"]),
    ]
    slab_np, layout = _pack_slab(named)
    slab = jnp.asarray(slab_np)
    adj_bias = jnp.asarray(_build_adj_bias(edge_index, n, n_pad))

    kernel = functools.partial(_net_kernel, layout=layout, n_pad=n_pad)
    call = pl.pallas_call(
        kernel,
        out_shape=jax.ShapeDtypeStruct((1, g), jnp.float32),   # lane-dense row
        in_specs=[_VMEM, _VMEM, _VMEM],     # 3 DMAs total: x, adj_bias, slab
        out_specs=_VMEM,
        # Scaling (v7x): grid over dst tiles + dimension_semantics=("parallel",)
        # for both TensorCores; int8/bf16 bias; vmem_limit_bytes for 64 MiB VMEM.
    )

    @jax.jit
    def forward(x):
        x = x.astype(jnp.float32)
        if n_pad != n:
            x = jnp.pad(x, ((0, n_pad - n), (0, 0)))     # cheap; no scatter
        out = call(x, adj_bias, slab)                    # [1, G]
        return out[0]                                    # squeeze(-1) -> [G]

    return forward


# --------------------------------------------------------------------------
# Parameter init (same structure as torch Net)
# --------------------------------------------------------------------------
def init_params(key, embed_dim=19, heads1=2, heads2=1):
    ks = jax.random.split(key, 12)

    def w(k, shape, scale=0.1):
        return (scale * jax.random.normal(k, shape)).astype(jnp.float32)

    p = {}
    # conv1: GATConv(19, 5, heads=2)
    p["w1"] = w(ks[0], (embed_dim, heads1 * 5))
    p["as1"] = w(ks[1], (heads1, 5))
    p["ad1"] = w(ks[2], (heads1, 5))
    p["b1"] = jnp.zeros((1, heads1 * 5), jnp.float32)
    # conv2: GATConv(10, 2, heads=2)
    p["w2"] = w(ks[3], (heads1 * 5, heads1 * 2))
    p["as2"] = w(ks[4], (heads1, 2))
    p["ad2"] = w(ks[5], (heads1, 2))
    p["b2"] = jnp.zeros((1, heads1 * 2), jnp.float32)
    # conv3: GATConv(4, 2, heads=1)
    p["w3"] = w(ks[6], (heads1 * 2, heads2 * 2))
    p["as3"] = w(ks[7], (heads2, 2))
    p["ad3"] = w(ks[8], (heads2, 2))
    p["b3"] = jnp.zeros((1, heads2 * 2), jnp.float32)
    # lin1: Linear(14, 7), lin2: Linear(7, 1)   (stored as W^T)
    p["lw1"] = w(ks[9], (14, 7))
    p["lb1"] = jnp.zeros((1, 7), jnp.float32)
    p["lw2"] = w(ks[10], (7, 1))
    p["lb2"] = jnp.zeros((1, 1), jnp.float32)
    return p


# --------------------------------------------------------------------------
if __name__ == "__main__":
    key = jax.random.PRNGKey(0)
    k_param, k_x = jax.random.split(key)

    # 4 graphs of 7 nodes each (28 nodes); bidirectional ring per graph.
    num_graphs = 4
    n = num_graphs * NODES_PER_GRAPH
    edges = []
    for gidx in range(num_graphs):
        base = gidx * NODES_PER_GRAPH
        for i in range(NODES_PER_GRAPH):
            j = (i + 1) % NODES_PER_GRAPH
            edges.append((base + i, base + j))
            edges.append((base + j, base + i))
    edge_index = np.array(edges, dtype=np.int32).T           # [2, E]

    x = jax.random.normal(k_x, (n, 19), dtype=jnp.float32)
    params = init_params(k_param)
    forward = build_net(params, edge_index, n)                # host-side prep, once

    out = forward(x)
    out = jax.block_until_ready(out)
    assert out.shape == (num_graphs,), out.shape
    assert bool(jnp.all(jnp.isfinite(out)))
    print("KERNEL_OK")
</pallas_src>

<mosaic_0001>
module attributes {stable_mosaic.version = 11 : i64} {
  func.func @_net_kernel(%arg0: memref<32x19xf32, #tpu.memory_space<vmem>>, %arg1: memref<32x32xf32, #tpu.memory_space<vmem>>, %arg2: memref<224x128xf32, #tpu.memory_space<vmem>>, %arg3: memref<1x4xf32, #tpu.memory_space<vmem>>) attributes {dimension_semantics = [], scalar_prefetch = 0 : i64, scratch_operands = 0 : i64, tpu.core_type = #tpu.core_type<tc>} {
    %c0 = arith.constant 0 : index
    %c0_0 = arith.constant 0 : index
    %0 = vector.load %arg1[%c0, %c0_0] : memref<32x32xf32, #tpu.memory_space<vmem>>, vector<32x32xf32>
    %cst = arith.constant 1.000000e+00 : f32
    %1 = vector.broadcast %cst : f32 to vector<32x1xf32>
    %c0_1 = arith.constant 0 : index
    %c0_2 = arith.constant 0 : index
    %2 = vector.load %arg0[%c0_1, %c0_2] : memref<32x19xf32, #tpu.memory_space<vmem>>, vector<32x19xf32>
    %c0_3 = arith.constant 0 : index
    %c0_4 = arith.constant 0 : index
    %3 = vector.load %arg2[%c0_3, %c0_4] : memref<224x128xf32, #tpu.memory_space<vmem>>, vector<19x10xf32>
    %c24 = arith.constant 24 : index
    %c0_5 = arith.constant 0 : index
    %4 = vector.load %arg2[%c24, %c0_5] : memref<224x128xf32, #tpu.memory_space<vmem>>, vector<2x10xf32>
    %c32 = arith.constant 32 : index
    %c0_6 = arith.constant 0 : index
    %5 = vector.load %arg2[%c32, %c0_6] : memref<224x128xf32, #tpu.memory_space<vmem>>, vector<10x2xf32>
    %c48 = arith.constant 48 : index
    %c0_7 = arith.constant 0 : index
    %6 = vector.load %arg2[%c48, %c0_7] : memref<224x128xf32, #tpu.memory_space<vmem>>, vector<1x10xf32>
    %cst_8 = arith.constant dense<0.000000e+00> : vector<32x10xf32>
    %7 = tpu.matmul %2, %3, %cst_8 {dimension_numbers = #tpu.dot_dimension_numbers<[1], [0], [0], [1], [0, 0, 1, 1], [], []>} : vector<32x19xf32>, vector<19x10xf32>, vector<32x10xf32> -> vector<32x10xf32>
    %cst_9 = arith.constant dense<0.000000e+00> : vector<32x2xf32>
    %8 = tpu.matmul %7, %5, %cst_9 {dimension_numbers = #tpu.dot_dimension_numbers<[1], [0], [0], [1], [0, 0, 1, 1], [], []>} : vector<32x10xf32>, vector<10x2xf32>, vector<32x2xf32> -> vector<32x2xf32>
    %cst_10 = arith.constant dense<0.000000e+00> : vector<2x32xf32>
    %9 = tpu.matmul %4, %7, %cst_10 {dimension_numbers = #tpu.dot_dimension_numbers<[1], [1], [0], [0], [0, 0, 1, 0], [], []>} : vector<2x10xf32>, vector<32x10xf32>, vector<2x32xf32> -> vector<2x32xf32>
    %10 = tpu.concatenate %7, %1 in 1 : vector<32x10xf32>, vector<32x1xf32> -> vector<32x11xf32>
    %11 = vector.extract_strided_slice %8 {offsets = [0, 0], sizes = [32, 1], strides = [1, 1]} : vector<32x2xf32> to vector<32x1xf32>
    %12 = vector.extract_strided_slice %9 {offsets = [0, 0], sizes = [1, 32], strides = [1, 1]} : vector<2x32xf32> to vector<1x32xf32>
    %13 = vector.broadcast %11 : vector<32x1xf32> to vector<32x32xf32>
    %14 = vector.broadcast %12 : vector<1x32xf32> to vector<32x32xf32>
    %15 = arith.addf %13, %14 : vector<32x32xf32>
    %cst_11 = arith.constant 0.000000e+00 : f32
    %16 = vector.broadcast %cst_11 : f32 to vector<32x32xf32>
    %17 = arith.cmpf ogt, %15, %16 : vector<32x32xf32>
    %cst_12 = arith.constant 2.000000e-01 : f32
    %18 = vector.broadcast %cst_12 : f32 to vector<32x32xf32>
    %19 = arith.mulf %18, %15 : vector<32x32xf32>
    %20 = arith.select %17, %15, %19 : vector<32x32xi1>, vector<32x32xf32>
    %21 = arith.addf %20, %0 : vector<32x32xf32>
    %cst_13 = arith.constant dense<0xFF800000> : vector<32xf32>
    %22 = vector.multi_reduction <maximumf>, %21, %cst_13 [1] : vector<32x32xf32> to vector<32xf32>
    %23 = vector.shape_cast %22 : vector<32xf32> to vector<32x1xf32>
    %24 = vector.broadcast %23 : vector<32x1xf32> to vector<32x32xf32>
    %25 = arith.subf %21, %24 : vector<32x32xf32>
    %26 = math.exp %25 : vector<32x32xf32>
    %cst_14 = arith.constant dense<0.000000e+00> : vector<32x11xf32>
    %27 = tpu.matmul %26, %10, %cst_14 {dimension_numbers = #tpu.dot_dimension_numbers<[1], [0], [0], [1], [0, 0, 1, 1], [], []>} : vector<32x32xf32>, vector<32x11xf32>, vector<32x11xf32> -> vector<32x11xf32>
    %28 = vector.extract_strided_slice %27 {offsets = [0, 10], sizes = [32, 1], strides = [1, 1]} : vector<32x11xf32> to vector<32x1xf32>
    %29 = vector.extract_strided_slice %27 {offsets = [0, 0], sizes = [32, 5], strides = [1, 1]} : vector<32x11xf32> to vector<32x5xf32>
    %30 = tpu.reciprocal %28 {approx = true} : vector<32x1xf32> -> vector<32x1xf32>
    %31 = vector.broadcast %30 : vector<32x1xf32> to vector<32x5xf32>
    %32 = arith.mulf %29, %31 : vector<32x5xf32>
    %33 = vector.extract_strided_slice %8 {offsets = [0, 1], sizes = [32, 1], strides = [1, 1]} : vector<32x2xf32> to vector<32x1xf32>
    %34 = vector.extract_strided_slice %9 {offsets = [1, 0], sizes = [1, 32], strides = [1, 1]} : vector<2x32xf32> to vector<1x32xf32>
    %35 = vector.broadcast %33 : vector<32x1xf32> to vector<32x32xf32>
    %36 = vector.broadcast %34 : vector<1x32xf32> to vector<32x32xf32>
    %37 = arith.addf %35, %36 : vector<32x32xf32>
    %cst_15 = arith.constant 0.000000e+00 : f32
    %38 = vector.broadcast %cst_15 : f32 to vector<32x32xf32>
    %39 = arith.cmpf ogt, %37, %38 : vector<32x32xf32>
    %cst_16 = arith.constant 2.000000e-01 : f32
    %40 = vector.broadcast %cst_16 : f32 to vector<32x32xf32>
    %41 = arith.mulf %40, %37 : vector<32x32xf32>
    %42 = arith.select %39, %37, %41 : vector<32x32xi1>, vector<32x32xf32>
    %43 = arith.addf %42, %0 : vector<32x32xf32>
    %cst_17 = arith.constant dense<0xFF800000> : vector<32xf32>
    %44 = vector.multi_reduction <maximumf>, %43, %cst_17 [1] : vector<32x32xf32> to vector<32xf32>
    %45 = vector.shape_cast %44 : vector<32xf32> to vector<32x1xf32>
    %46 = vector.broadcast %45 : vector<32x1xf32> to vector<32x32xf32>
    %47 = arith.subf %43, %46 : vector<32x32xf32>
    %48 = math.exp %47 : vector<32x32xf32>
    %cst_18 = arith.constant dense<0.000000e+00> : vector<32x11xf32>
    %49 = tpu.matmul %48, %10, %cst_18 {dimension_numbers = #tpu.dot_dimension_numbers<[1], [0], [0], [1], [0, 0, 1, 1], [], []>} : vector<32x32xf32>, vector<32x11xf32>, vector<32x11xf32> -> vector<32x11xf32>
    %50 = vector.extract_strided_slice %49 {offsets = [0, 10], sizes = [32, 1], strides = [1, 1]} : vector<32x11xf32> to vector<32x1xf32>
    %51 = vector.extract_strided_slice %49 {offsets = [0, 5], sizes = [32, 5], strides = [1, 1]} : vector<32x11xf32> to vector<32x5xf32>
    %52 = tpu.reciprocal %50 {approx = true} : vector<32x1xf32> -> vector<32x1xf32>
    %53 = vector.broadcast %52 : vector<32x1xf32> to vector<32x5xf32>
    %54 = arith.mulf %51, %53 : vector<32x5xf32>
    %55 = tpu.concatenate %32, %54 in 1 : vector<32x5xf32>, vector<32x5xf32> -> vector<32x10xf32>
    %56 = vector.broadcast %6 : vector<1x10xf32> to vector<32x10xf32>
    %57 = arith.addf %55, %56 : vector<32x10xf32>
    %cst_19 = arith.constant 0.000000e+00 : f32
    %58 = vector.broadcast %cst_19 : f32 to vector<32x10xf32>
    %59 = arith.maximumf %57, %58 : vector<32x10xf32>
    %c56 = arith.constant 56 : index
    %c0_20 = arith.constant 0 : index
    %60 = vector.load %arg2[%c56, %c0_20] : memref<224x128xf32, #tpu.memory_space<vmem>>, vector<10x4xf32>
    %c72 = arith.constant 72 : index
    %c0_21 = arith.constant 0 : index
    %61 = vector.load %arg2[%c72, %c0_21] : memref<224x128xf32, #tpu.memory_space<vmem>>, vector<2x4xf32>
    %c80 = arith.constant 80 : index
    %c0_22 = arith.constant 0 : index
    %62 = vector.load %arg2[%c80, %c0_22] : memref<224x128xf32, #tpu.memory_space<vmem>>, vector<4x2xf32>
    %c88 = arith.constant 88 : index
    %c0_23 = arith.constant 0 : index
    %63 = vector.load %arg2[%c88, %c0_23] : memref<224x128xf32, #tpu.memory_space<vmem>>, vector<1x4xf32>
    %cst_24 = arith.constant dense<0.000000e+00> : vector<32x4xf32>
    %64 = tpu.matmul %59, %60, %cst_24 {dimension_numbers = #tpu.dot_dimension_numbers<[1], [0], [0], [1], [0, 0, 1, 1], [], []>} : vector<32x10xf32>, vector<10x4xf32>, vector<32x4xf32> -> vector<32x4xf32>
    %cst_25 = arith.constant dense<0.000000e+00> : vector<32x2xf32>
    %65 = tpu.matmul %64, %62, %cst_25 {dimension_numbers = #tpu.dot_dimension_numbers<[1], [0], [0], [1], [0, 0, 1, 1], [], []>} : vector<32x4xf32>, vector<4x2xf32>, vector<32x2xf32> -> vector<32x2xf32>
    %cst_26 = arith.constant dense<0.000000e+00> : vector<2x32xf32>
    %66 = tpu.matmul %61, %64, %cst_26 {dimension_numbers = #tpu.dot_dimension_numbers<[1], [1], [0], [0], [0, 0, 1, 0], [], []>} : vector<2x4xf32>, vector<32x4xf32>, vector<2x32xf32> -> vector<2x32xf32>
    %67 = tpu.concatenate %64, %1 in 1 : vector<32x4xf32>, vector<32x1xf32> -> vector<32x5xf32>
    %68 = vector.extract_strided_slice %65 {offsets = [0, 0], sizes = [32, 1], strides = [1, 1]} : vector<32x2xf32> to vector<32x1xf32>
    %69 = vector.extract_strided_slice %66 {offsets = [0, 0], sizes = [1, 32], strides = [1, 1]} : vector<2x32xf32> to vector<1x32xf32>
    %70 = vector.broadcast %68 : vector<32x1xf32> to vector<32x32xf32>
    %71 = vector.broadcast %69 : vector<1x32xf32> to vector<32x32xf32>
    %72 = arith.addf %70, %71 : vector<32x32xf32>
    %cst_27 = arith.constant 0.000000e+00 : f32
    %73 = vector.broadcast %cst_27 : f32 to vector<32x32xf32>
    %74 = arith.cmpf ogt, %72, %73 : vector<32x32xf32>
    %cst_28 = arith.constant 2.000000e-01 : f32
    %75 = vector.broadcast %cst_28 : f32 to vector<32x32xf32>
    %76 = arith.mulf %75, %72 : vector<32x32xf32>
    %77 = arith.select %74, %72, %76 : vector<32x32xi1>, vector<32x32xf32>
    %78 = arith.addf %77, %0 : vector<32x32xf32>
    %cst_29 = arith.constant dense<0xFF800000> : vector<32xf32>
    %79 = vector.multi_reduction <maximumf>, %78, %cst_29 [1] : vector<32x32xf32> to vector<32xf32>
    %80 = vector.shape_cast %79 : vector<32xf32> to vector<32x1xf32>
    %81 = vector.broadcast %80 : vector<32x1xf32> to vector<32x32xf32>
    %82 = arith.subf %78, %81 : vector<32x32xf32>
    %83 = math.exp %82 : vector<32x32xf32>
    %cst_30 = arith.constant dense<0.000000e+00> : vector<32x5xf32>
    %84 = tpu.matmul %83, %67, %cst_30 {dimension_numbers = #tpu.dot_dimension_numbers<[1], [0], [0], [1], [0, 0, 1, 1], [], []>} : vector<32x32xf32>, vector<32x5xf32>, vector<32x5xf32> -> vector<32x5xf32>
    %85 = vector.extract_strided_slice %84 {offsets = [0, 4], sizes = [32, 1], strides = [1, 1]} : vector<32x5xf32> to vector<32x1xf32>
    %86 = vector.extract_strided_slice %84 {offsets = [0, 0], sizes = [32, 2], strides = [1, 1]} : vector<32x5xf32> to vector<32x2xf32>
    %87 = tpu.reciprocal %85 {approx = true} : vector<32x1xf32> -> vector<32x1xf32>
    %88 = vector.broadcast %87 : vector<32x1xf32> to vector<32x2xf32>
    %89 = arith.mulf %86, %88 : vector<32x2xf32>
    %90 = vector.extract_strided_slice %65 {offsets = [0, 1], sizes = [32, 1], strides = [1, 1]} : vector<32x2xf32> to vector<32x1xf32>
    %91 = vector.extract_strided_slice %66 {offsets = [1, 0], sizes = [1, 32], strides = [1, 1]} : vector<2x32xf32> to vector<1x32xf32>
    %92 = vector.broadcast %90 : vector<32x1xf32> to vector<32x32xf32>
    %93 = vector.broadcast %91 : vector<1x32xf32> to vector<32x32xf32>
    %94 = arith.addf %92, %93 : vector<32x32xf32>
    %cst_31 = arith.constant 0.000000e+00 : f32
    %95 = vector.broadcast %cst_31 : f32 to vector<32x32xf32>
    %96 = arith.cmpf ogt, %94, %95 : vector<32x32xf32>
    %cst_32 = arith.constant 2.000000e-01 : f32
    %97 = vector.broadcast %cst_32 : f32 to vector<32x32xf32>
    %98 = arith.mulf %97, %94 : vector<32x32xf32>
    %99 = arith.select %96, %94, %98 : vector<32x32xi1>, vector<32x32xf32>
    %100 = arith.addf %99, %0 : vector<32x32xf32>
    %cst_33 = arith.constant dense<0xFF800000> : vector<32xf32>
    %101 = vector.multi_reduction <maximumf>, %100, %cst_33 [1] : vector<32x32xf32> to vector<32xf32>
    %102 = vector.shape_cast %101 : vector<32xf32> to vector<32x1xf32>
    %103 = vector.broadcast %102 : vector<32x1xf32> to vector<32x32xf32>
    %104 = arith.subf %100, %103 : vector<32x32xf32>
    %105 = math.exp %104 : vector<32x32xf32>
    %cst_34 = arith.constant dense<0.000000e+00> : vector<32x5xf32>
    %106 = tpu.matmul %105, %67, %cst_34 {dimension_numbers = #tpu.dot_dimension_numbers<[1], [0], [0], [1], [0, 0, 1, 1], [], []>} : vector<32x32xf32>, vector<32x5xf32>, vector<32x5xf32> -> vector<32x5xf32>
    %107 = vector.extract_strided_slice %106 {offsets = [0, 4], sizes = [32, 1], strides = [1, 1]} : vector<32x5xf32> to vector<32x1xf32>
    %108 = vector.extract_strided_slice %106 {offsets = [0, 2], sizes = [32, 2], strides = [1, 1]} : vector<32x5xf32> to vector<32x2xf32>
    %109 = tpu.reciprocal %107 {approx = true} : vector<32x1xf32> -> vector<32x1xf32>
    %110 = vector.broadcast %109 : vector<32x1xf32> to vector<32x2xf32>
    %111 = arith.mulf %108, %110 : vector<32x2xf32>
    %112 = tpu.concatenate %89, %111 in 1 : vector<32x2xf32>, vector<32x2xf32> -> vector<32x4xf32>
    %113 = vector.broadcast %63 : vector<1x4xf32> to vector<32x4xf32>
    %114 = arith.addf %112, %113 : vector<32x4xf32>
    %cst_35 = arith.constant 0.000000e+00 : f32
    %115 = vector.broadcast %cst_35 : f32 to vector<32x4xf32>
    %116 = arith.maximumf %114, %115 : vector<32x4xf32>
    %c96 = arith.constant 96 : index
    %c0_36 = arith.constant 0 : index
    %117 = vector.load %arg2[%c96, %c0_36] : memref<224x128xf32, #tpu.memory_space<vmem>>, vector<4x2xf32>
    %c104 = arith.constant 104 : index
    %c0_37 = arith.constant 0 : index
    %118 = vector.load %arg2[%c104, %c0_37] : memref<224x128xf32, #tpu.memory_space<vmem>>, vector<1x2xf32>
    %c112 = arith.constant 112 : index
    %c0_38 = arith.constant 0 : index
    %119 = vector.load %arg2[%c112, %c0_38] : memref<224x128xf32, #tpu.memory_space<vmem>>, vector<2x1xf32>
    %c120 = arith.constant 120 : index
    %c0_39 = arith.constant 0 : index
    %120 = vector.load %arg2[%c120, %c0_39] : memref<224x128xf32, #tpu.memory_space<vmem>>, vector<1x2xf32>
    %cst_40 = arith.constant dense<0.000000e+00> : vector<32x2xf32>
    %121 = tpu.matmul %116, %117, %cst_40 {dimension_numbers = #tpu.dot_dimension_numbers<[1], [0], [0], [1], [0, 0, 1, 1], [], []>} : vector<32x4xf32>, vector<4x2xf32>, vector<32x2xf32> -> vector<32x2xf32>
    %cst_41 = arith.constant dense<0.000000e+00> : vector<32x1xf32>
    %122 = tpu.matmul %121, %119, %cst_41 {dimension_numbers = #tpu.dot_dimension_numbers<[1], [0], [0], [1], [0, 0, 1, 1], [], []>} : vector<32x2xf32>, vector<2x1xf32>, vector<32x1xf32> -> vector<32x1xf32>
    %cst_42 = arith.constant dense<0.000000e+00> : vector<1x32xf32>
    %123 = tpu.matmul %118, %121, %cst_42 {dimension_numbers = #tpu.dot_dimension_numbers<[1], [1], [0], [0], [0, 0, 1, 0], [], []>} : vector<1x2xf32>, vector<32x2xf32>, vector<1x32xf32> -> vector<1x32xf32>
    %124 = tpu.concatenate %121, %1 in 1 : vector<32x2xf32>, vector<32x1xf32> -> vector<32x3xf32>
    %125 = vector.broadcast %122 : vector<32x1xf32> to vector<32x32xf32>
    %126 = vector.broadcast %123 : vector<1x32xf32> to vector<32x32xf32>
    %127 = arith.addf %125, %126 : vector<32x32xf32>
    %cst_43 = arith.constant 0.000000e+00 : f32
    %128 = vector.broadcast %cst_43 : f32 to vector<32x32xf32>
    %129 = arith.cmpf ogt, %127, %128 : vector<32x32xf32>
    %cst_44 = arith.constant 2.000000e-01 : f32
    %130 = vector.broadcast %cst_44 : f32 to vector<32x32xf32>
    %131 = arith.mulf %130, %127 : vector<32x32xf32>
    %132 = arith.select %129, %127, %131 : vector<32x32xi1>, vector<32x32xf32>
    %133 = arith.addf %132, %0 : vector<32x32xf32>
    %cst_45 = arith.constant dense<0xFF800000> : vector<32xf32>
    %134 = vector.multi_reduction <maximumf>, %133, %cst_45 [1] : vector<32x32xf32> to vector<32xf32>
    %135 = vector.shape_cast %134 : vector<32xf32> to vector<32x1xf32>
    %136 = vector.broadcast %135 : vector<32x1xf32> to vector<32x32xf32>
    %137 = arith.subf %133, %136 : vector<32x32xf32>
    %138 = math.exp %137 : vector<32x32xf32>
    %cst_46 = arith.constant dense<0.000000e+00> : vector<32x3xf32>
    %139 = tpu.matmul %138, %124, %cst_46 {dimension_numbers = #tpu.dot_dimension_numbers<[1], [0], [0], [1], [0, 0, 1, 1], [], []>} : vector<32x32xf32>, vector<32x3xf32>, vector<32x3xf32> -> vector<32x3xf32>
    %140 = vector.extract_strided_slice %139 {offsets = [0, 2], sizes = [32, 1], strides = [1, 1]} : vector<32x3xf32> to vector<32x1xf32>
    %141 = vector.extract_strided_slice %139 {offsets = [0, 0], sizes = [32, 2], strides = [1, 1]} : vector<32x3xf32> to vector<32x2xf32>
    %142 = tpu.reciprocal %140 {approx = true} : vector<32x1xf32> -> vector<32x1xf32>
    %143 = vector.broadcast %142 : vector<32x1xf32> to vector<32x2xf32>
    %144 = arith.mulf %141, %143 : vector<32x2xf32>
    %145 = vector.broadcast %120 : vector<1x2xf32> to vector<32x2xf32>
    %146 = arith.addf %144, %145 : vector<32x2xf32>
    %cst_47 = arith.constant 0.000000e+00 : f32
    %147 = vector.broadcast %cst_47 : f32 to vector<32x2xf32>
    %148 = arith.maximumf %146, %147 : vector<32x2xf32>
    %149 = vector.extract_strided_slice %148 {offsets = [0, 0], sizes = [32, 1], strides = [1, 1]} : vector<32x2xf32> to vector<32x1xf32>
    %c128 = arith.constant 128 : index
    %c0_48 = arith.constant 0 : index
    %150 = vector.load %arg2[%c128, %c0_48] : memref<224x128xf32, #tpu.memory_space<vmem>>, vector<32x7xf32>
    %151 = vector.broadcast %149 : vector<32x1xf32> to vector<32x7xf32>
    %152 = arith.mulf %151, %150 : vector<32x7xf32>
    %153 = vector.extract_strided_slice %148 {offsets = [0, 1], sizes = [32, 1], strides = [1, 1]} : vector<32x2xf32> to vector<32x1xf32>
    %c160 = arith.constant 160 : index
    %c0_49 = arith.constant 0 : index
    %154 = vector.load %arg2[%c160, %c0_49] : memref<224x128xf32, #tpu.memory_space<vmem>>, vector<32x7xf32>
    %155 = vector.broadcast %153 : vector<32x1xf32> to vector<32x7xf32>
    %156 = arith.mulf %155, %154 : vector<32x7xf32>
    %157 = arith.addf %152, %156 : vector<32x7xf32>
    %c192 = arith.constant 192 : index
    %c0_50 = arith.constant 0 : index
    %158 = vector.load %arg2[%c192, %c0_50] : memref<224x128xf32, #tpu.memory_space<vmem>>, vector<4x32xf32>
    %cst_51 = arith.constant dense<0.000000e+00> : vector<7x4xf32>
    %159 = tpu.matmul %157, %158, %cst_51 {dimension_numbers = #tpu.dot_dimension_numbers<[0], [1], [1], [0], [0, 1, 1, 0], [], []>} : vector<32x7xf32>, vector<4x32xf32>, vector<7x4xf32> -> vector<7x4xf32>
    %c200 = arith.constant 200 : index
    %c0_52 = arith.constant 0 : index
    %160 = vector.load %arg2[%c200, %c0_52] : memref<224x128xf32, #tpu.memory_space<vmem>>, vector<7x1xf32>
    %161 = vector.broadcast %160 : vector<7x1xf32> to vector<7x4xf32>
    %162 = arith.addf %159, %161 : vector<7x4xf32>
    %cst_53 = arith.constant 0.000000e+00 : f32
    %163 = vector.broadcast %cst_53 : f32 to vector<7x4xf32>
    %164 = arith.maximumf %162, %163 : vector<7x4xf32>
    %c208 = arith.constant 208 : index
    %c0_54 = arith.constant 0 : index
    %165 = vector.load %arg2[%c208, %c0_54] : memref<224x128xf32, #tpu.memory_space<vmem>>, vector<7x1xf32>
    %cst_55 = arith.constant dense<0.000000e+00> : vector<1x4xf32>
    %166 = tpu.matmul %165, %164, %cst_55 {dimension_numbers = #tpu.dot_dimension_numbers<[0], [0], [1], [1], [0, 1, 1, 1], [], []>} : vector<7x1xf32>, vector<7x4xf32>, vector<1x4xf32> -> vector<1x4xf32>
    %c216 = arith.constant 216 : index
    %c0_56 = arith.constant 0 : index
    %167 = vector.load %arg2[%c216, %c0_56] : memref<224x128xf32, #tpu.memory_space<vmem>>, vector<1x1xf32>
    %168 = vector.broadcast %167 : vector<1x1xf32> to vector<1x4xf32>
    %169 = arith.addf %166, %168 : vector<1x4xf32>
    %c0_57 = arith.constant 0 : index
    %c0_58 = arith.constant 0 : index
    %170 = vector.load %arg3[%c0_57, %c0_58] : memref<1x4xf32, #tpu.memory_space<vmem>>, vector<1x4xf32>
    tpu.vector_store %arg3[%c0_57, %c0_58], %169 {strides = array<i32>} : memref<1x4xf32, #tpu.memory_space<vmem>>, vector<1x4xf32>,
    return
  }
}

</mosaic_0001>

<bundles_post_ra>
// kernel: forward.1
= control target key start
LH: loop header
LB: loop body
LE: loop exit
PB: predicated region body
PF: predicated region fallthrough
CT: control target
= control target key end

     0   :  { %8 = vsyncpa [#allocation3], 0  ;;  %s1780_s0 = inlined_call_operand.vmem [shape: f32[32,19], index: 0, kind: input, shape index: {}]   ;;  %s1781_s1 = inlined_call_operand.vmem [shape: f32[32,32], index: 1, kind: input, shape index: {}]   ;;  %s1782_s2 = inlined_call_operand.hbm [shape: f32[224,128], index: 2, kind: input, shape index: {}]   ;;  %s1783_s3 = inlined_call_operand.hbm [shape: f32[1,4], index: 3, kind: output, shape index: {}]  }
   0x1   :  { %9 = vsyncpa [#allocation4], 0  ;;  %s18_s14 = sshll.u32 %s1782_s2, 4  ;;  %s1559_s15 = smov [#allocation2]   ;;  %s19_s14 = int_to_ptr.hbm [resolvable:$true] %s18_s14 }
   0x2   :  { %s20_s16 = sshll.u32 %s1559_s15, 4  ;;  %s1560_s17 = smov 128   ;;  %s21_s16 = int_to_ptr.vmem [resolvable:$true] %s20_s16 }
   0x3   :  { %s1561_s18 = smov 8  }
   0x4   :  { %26 = dma.hbm_to_vmem [thread:$0]  %s19_s14, 3584, %s21_s16, [#allocation3], %s1560_s17, %s1560_s17, %s1561_s18  }
   0x5   :  { %1555 = dma.done.wait [#allocation3], 3584  }
   0x6   :  { %1556 = vsyncadd [#allocation3], 4294963712  ;;  %vm59_vm0 = vcmask 1042432   ;;  %v41_v0 = vld [vmem:[#allocation2 + $0x10] sm:$0x7]  ;;  %v40_v1 = vld [vmem:[#allocation2 + $0x8] sm:$0xff] }
   0x7   :  { %vm105_vm1 = vcmask 1041408   ;;  %1314 = vmatpush.msk.msra.mxu0 %vm59_vm0, %v41_v0  ;;  %v39_v2 = vld [vmem:[#allocation2] sm:$0xff]  ;;  %v44_v3 = vld [vmem:[#allocation2 + $0x28] sm:$0x3]  ;;  %vm46_vm2 = vcmask 154624   ;;  %v37_v6 = vld [vmem:[%s1780_s0 + $0x10] sm:$0xff] }
   0x8   :  { %v35_v4 = vld [vmem:[%s1780_s0] sm:$0xff]  ;;  %1319 = vmatpush.msk.msra.mxu1 %vm105_vm1, %v44_v3  ;;  %v36_v5 = vld [vmem:[%s1780_s0 + $0x8] sm:$0xff]  ;;  %v38_v7 = vld [vmem:[%s1780_s0 + $0x18] sm:$0xff]  ;;  %vm92_vm3 = vcmask 80896   ;;  %v1562_v11 = vmov 0   ;;  %v1563_v21 = vmov 1  }
   0x9   :  { %77 = vmatpush.msra.mxu0 %v40_v1  ;;  %v43_v8 = vld [vmem:[#allocation2 + $0x20] sm:$0xff]  ;;  %1393 = vset.pattern.permute.xlu0 %v1562_v11  ;;  %v42_v18 = vld [vmem:[#allocation2 + $0x18] sm:$0x3]  ;;  %vm206_vm6 = vcmask 261120   ;;  %v1637_v37 = vld [vmem:[%s1781_s1 + $0x10] sm:$0xff]  ;;  %vm430_vm13 = vcmask 39936  }
   0xa   :  { %124 = vmatpush.msra.mxu1 %v43_v8  ;;  %1395 = vset.pattern.permute.xlu1 %v1562_v11  ;;  %v1631_v33 = vld [vmem:[%s1781_s1] sm:$0xff]  ;;  %v1647_v49 = vld [vmem:[%s1781_s1 + $0x8] sm:$0xff]  ;;  %v1658_v61 = vld [vmem:[%s1781_s1 + $0x18] sm:$0xff]  ;;  %vm506_vm14 = vcmask 1043456   ;;  %vm493_vm15 = vcmask 31744   ;;  %s1567_s1 = smov [#allocation5]  }
   0xb   :  { %78 = vmatpush.msra.mxu0 %v39_v2  ;;  %1397 = vset.pattern.permute.xlu2 %v1562_v11  ;;  %s1302_s6 = sshll.u32 %s1567_s1, 4  ;;  %s1304_s9 = sshll.u32 %s1783_s3, 4  ;;  %s1303_s6 = int_to_ptr.vmem [resolvable:$true] %s1302_s6  ;;  %s1305_s9 = int_to_ptr.hbm [resolvable:$true] %s1304_s9 }
   0xc   :  { %1315 = vmatmul.msk.f32.vlgmr.msra.gmra.mxu0 %vm46_vm2, %v35_v4 }
  0x14   :  { %1316 = vmatmul.msk.f32.gmra.mxu0 %vm46_vm2, %v36_v5 }
  0x1c   :  { %1317 = vmatmul.msk.f32.gmra.mxu0 %vm46_vm2, %v37_v6 }
  0x24   :  { %1318 = vmatmul.msk.f32.gmra.mxu0 %vm46_vm2, %v38_v7 }
  0x89   :  { %v80_v9 = vpop.f32.mrf.mxu0 }
  0x8a   :  { %1320 = vmatmul.msk.f32.vlgmr.msra.gmra.mxu1 %vm92_vm3, %v80_v9  ;;  %v161_v17 = vsel %vm92_vm3, %v80_v9, 1.0 }
  0x91   :  { %v83_v10 = vpop.f32.mrf.mxu0 }
  0x92   :  { %1321 = vmatmul.msk.f32.gmra.mxu1 %vm92_vm3, %v83_v10  ;;  %v162_v16 = vsel %vm92_vm3, %v83_v10, 1.0 }
  0x99   :  { %v86_v12 = vpop.f32.mrf.mxu0 }
  0x9a   :  { %1322 = vmatmul.msk.f32.gmra.mxu1 %vm92_vm3, %v86_v12  ;;  %v163_v15 = vsel %vm92_vm3, %v86_v12, 1.0 }
  0xa1   :  { %v89_v13 = vpop.f32.mrf.mxu0 }
  0xa2   :  { %1324 = vmatpush.xpose.msk.msrb.mxu1 %vm92_vm3, %v89_v13  ;;  %v164_v14 = vsel %vm92_vm3, %v89_v13, 1.0 }
  0xa3   :  { %255 = vmatpush.msra.mxu3 %v164_v14  ;;  %385 = vmatpush.msra.mxu2 %v164_v14 }
  0xa4   :  { %1323 = vmatmul.msk.f32.gmra.mxu1 %vm92_vm3, %v89_v13 }
  0xa5   :  { %256 = vmatpush.msra.mxu3 %v163_v15  ;;  %386 = vmatpush.msra.mxu2 %v163_v15 }
  0xa6   :  { %1325 = vmatpush.xpose.msk.msrb.mxu1 %vm92_vm3, %v86_v12 }
  0xa7   :  { %257 = vmatpush.msra.mxu3 %v162_v16  ;;  %387 = vmatpush.msra.mxu2 %v162_v16 }
  0xa9   :  { %258 = vmatpush.msra.mxu3 %v161_v17  ;;  %388 = vmatpush.msra.mxu2 %v161_v17 }
  0xaa   :  { %1326 = vmatpush.xpose.msk.msrb.mxu1 %vm92_vm3, %v83_v10 }
  0xae   :  { %1327 = vmatpush.xpose.msk.msrb.mxu1 %vm92_vm3, %v80_v9 }
  0xb1   :  { %1328 = vmatmul.msk.f32.vlgmr.msrb.gmra.mxu1 %vm92_vm3, %v42_v18 }
 0x107   :  { %v126_v19 = vpop.f32.mrf.mxu1 }
 0x108   :  { %167 = vperm.xlu0 %1393, %v126_v19  }
 0x10f   :  { %v129_v20 = vpop.f32.mrf.mxu1 }
 0x110   :  { %1394 = vset.pattern.permute.xlu0 %v1563_v21  ;;  %172 = vperm.xlu1 %1395, %v129_v20  }
 0x111   :  { %301 = vperm.xlu0 %1394, %v126_v19  }
 0x117   :  { %v132_v22 = vpop.f32.mrf.mxu1 }
 0x118   :  { %1396 = vset.pattern.permute.xlu1 %v1563_v21  ;;  %177 = vperm.xlu2 %1397, %v132_v22  }
 0x119   :  { %305 = vperm.xlu1 %1396, %v129_v20  }
 0x120   :  { %1398 = vset.pattern.permute.xlu2 %v1563_v21 }
 0x121   :  { %1399 = vset.pattern.permute.xlu1 %v1562_v11  ;;  %309 = vperm.xlu2 %1398, %v132_v22   ;;  %v135_v23 = vpop.f32.mrf.mxu1 }
 0x122   :  { %182 = vperm.xlu1 %1399, %v135_v23  }
 0x129   :  { %313 = vperm.xlu2 %1398, %v135_v23  }
 0x12e   :  { %v158_v25 = vpop.f32.mrf.mxu1 }
 0x12f   :  { %v1624_v26 = vperm.slane %v158_v25, 0  ;;  %v316_v35 = vperm.slane %v158_v25, 1 }
 0x172   :  { %v178_v24 = vpop.permute.xlu2 %177 }
 0x173   :  { %v188_v27 = vadd.f32 %v1624_v26, %v178_v24 }
 0x175   :  { %v196_v31 = vmul.f32 0.2, %v188_v27  ;;  %vm192_vm5 = vcmp.gt.f32.partialorder %v188_v27, 0.0 }
 0x177   :  { %v200_v38 = vsel %vm192_vm5, %v188_v27, %v196_v31 }
 0x178   :  { %v1642_v44 = vadd.f32 %v200_v38, %v1637_v37 }
 0x17a   :  { %v168_v28 = vpop.permute.xlu0 %167  ;;  %v213_v53 = vsel %vm206_vm6, %v1642_v44, -inf }
 0x17b   :  { %v186_v29 = vadd.f32 %v1624_v26, %v168_v28  ;;  %v310_v30 = vpop.permute.xlu2 %309 }
 0x17c   :  { %v319_v45 = vadd.f32 %v316_v35, %v310_v30 }
 0x17d   :  { %vm190_vm4 = vcmp.gt.f32.partialorder %v186_v29, 0.0  ;;  %v194_v32 = vmul.f32 0.2, %v186_v29 }
 0x17e   :  { %v327_v54 = vmul.f32 0.2, %v319_v45  ;;  %vm323_vm10 = vcmp.gt.f32.partialorder %v319_v45, 0.0 }
 0x17f   :  { %v198_v34 = vsel %vm190_vm4, %v186_v29, %v194_v32 }
 0x180   :  { %v202_v36 = vadd.f32 %v198_v34, %v1631_v33  ;;  %v331_v0 = vsel %vm323_vm10, %v319_v45, %v327_v54  ;;  %vm830_vm10 = vcmask 15360  }
 0x181   :  { %v335_v3 = vadd.f32 %v331_v0, %v1637_v37 }
 0x182   :  { %v173_v39 = vpop.permute.xlu1 %172  ;;  %v207_v40 = vsel %vm206_vm6, %v202_v36, -inf }
 0x183   :  { %v187_v41 = vadd.f32 %v1624_v26, %v173_v39  ;;  %v302_v42 = vpop.permute.xlu0 %301  ;;  %v314_v43 = vpop.permute.xlu2 %313  ;;  %208 = vmax.xlane.f32.xlu0 %v207_v40  ;;  %v343_v8 = vsel %vm206_vm6, %v335_v3, -inf }
 0x184   :  { %v317_v46 = vadd.f32 %v316_v35, %v302_v42  ;;  %v320_v47 = vadd.f32 %v316_v35, %v314_v43 }
 0x185   :  { %vm191_vm7 = vcmp.gt.f32.partialorder %v187_v41, 0.0  ;;  %v195_v48 = vmul.f32 0.2, %v187_v41 }
 0x186   :  { %vm321_vm8 = vcmp.gt.f32.partialorder %v317_v46, 0.0  ;;  %v325_v50 = vmul.f32 0.2, %v317_v46  ;;  %v328_v51 = vmul.f32 0.2, %v320_v47  ;;  %vm324_vm9 = vcmp.gt.f32.partialorder %v320_v47, 0.0 }
 0x187   :  { %v199_v52 = vsel %vm191_vm7, %v187_v41, %v195_v48 }
 0x188   :  { %v203_v55 = vadd.f32 %v199_v52, %v1647_v49  ;;  %v329_v56 = vsel %vm321_vm8, %v317_v46, %v325_v50  ;;  %v332_v62 = vsel %vm324_vm9, %v320_v47, %v328_v51  ;;  %v1564_v52 = vmov 10  }
 0x189   :  { %v333_v57 = vadd.f32 %v329_v56, %v1631_v33  ;;  %v336_v2 = vadd.f32 %v332_v62, %v1658_v61  ;;  %1400 = vset.pattern.permute.xlu1 %v1564_v52  ;;  %1402 = vset.pattern.permute.xlu0 %v1564_v52 }
 0x18a   :  { %v210_v58 = vsel %vm206_vm6, %v203_v55, -inf  ;;  %1401 = vset.pattern.permute.xlu2 %v1564_v52 }
 0x18b   :  { %v306_v59 = vpop.permute.xlu1 %305  ;;  %211 = vmax.xlane.f32.xlu2 %v210_v58  ;;  %214 = vmax.xlane.f32.xlu0 %v213_v53  ;;  %v337_v60 = vsel %vm206_vm6, %v333_v57, -inf  ;;  %v346_v6 = vsel %vm206_vm6, %v336_v2, -inf }
 0x18c   :  { %v318_v63 = vadd.f32 %v316_v35, %v306_v59  ;;  %338 = vmax.xlane.f32.xlu1 %v337_v60 }
 0x18e   :  { %vm322_vm11 = vcmp.gt.f32.partialorder %v318_v63, 0.0  ;;  %v326_v1 = vmul.f32 0.2, %v318_v63 }
 0x190   :  { %v330_v4 = vsel %vm322_vm11, %v318_v63, %v326_v1 }
 0x191   :  { %v334_v5 = vadd.f32 %v330_v4, %v1647_v49 }
 0x193   :  { %347 = vmax.xlane.f32.xlu0 %v346_v6  ;;  %v340_v7 = vsel %vm206_vm6, %v334_v5, -inf  ;;  %v445_v6 = vld [vmem:[#allocation2 + $0x40] sm:$0x3] }
 0x194   :  { %v183_v9 = vpop.permute.xlu1 %182  ;;  %341 = vmax.xlane.f32.xlu2 %v340_v7  ;;  %344 = vmax.xlane.f32.xlu1 %v343_v8  ;;  %v444_v7 = vld [vmem:[#allocation2 + $0x38] sm:$0xff] }
 0x195   :  { %v189_v10 = vadd.f32 %v1624_v26, %v183_v9  ;;  %1337 = vmatpush.msk.msra.mxu1 %vm105_vm1, %v445_v6  ;;  %v1424_v9 = vld [vmem:[#allocation2 + $0x30] ss:$0 sm:$0xff] }
 0x197   :  { %vm193_vm12 = vcmp.gt.f32.partialorder %v189_v10, 0.0  ;;  %v197_v12 = vmul.f32 0.2, %v189_v10  ;;  %479 = vmatpush.msra.mxu1 %v444_v7 }
 0x199   :  { %v201_v13 = vsel %vm193_vm12, %v189_v10, %v197_v12 }
 0x19a   :  { %v205_v14 = vadd.f32 %v201_v13, %v1658_v61 }
 0x19c   :  { %v216_v15 = vsel %vm206_vm6, %v205_v14, -inf }
 0x19d   :  { %217 = vmax.xlane.f32.xlu2 %v216_v15 }
 0x1f6   :  { %v209_v16 = vpop.xlane.xlu0 %208 }
 0x1f7   :  { %v219_v17 = vsub.f32 %v202_v36, %v209_v16 }
 0x1f9   :  { %v223_v18 = vmul.f32 1.442695, %v219_v17  ;;  %v447_v17 = vld [vmem:[#allocation2 + $0x50] sm:$0xf] }
 0x1fa   :  { %1342 = vmatpush.msk.msrb.mxu0 %vm506_vm14, %v447_v17 }
 0x1fb   :  { %1427 = vpow2.f32 %v223_v18 }
 0x1fe   :  { %v212_v19 = vpop.xlane.xlu2 %211  ;;  %v215_v23 = vpop.xlane.xlu0 %214 }
 0x1ff   :  { %v220_v20 = vsub.f32 %v203_v55, %v212_v19  ;;  %v339_v22 = vpop.xlane.xlu1 %338  ;;  %v221_v28 = vsub.f32 %v1642_v44, %v215_v23 }
 0x200   :  { %v349_v24 = vsub.f32 %v333_v57, %v339_v22 }
 0x201   :  { %v1428_v25 = vpop.eup %1427  ;;  %v225_v27 = vmul.f32 1.442695, %v220_v20  ;;  %v227_v29 = vmul.f32 1.442695, %v221_v28 }
 0x202   :  { %v353_v26 = vmul.f32 1.442695, %v349_v24  ;;  %1329 = vmatmul.msk.f32.vlgmr.msra.gmra.mxu3 %vm206_vm6, %v1428_v25 }
 0x203   :  { %1429 = vpow2.f32 %v225_v27 }
 0x204   :  { %1431 = vpow2.f32 %v353_v26 }
 0x205   :  { %1433 = vpow2.f32 %v227_v29 }
 0x206   :  { %v348_v44 = vpop.xlane.xlu0 %347 }
 0x207   :  { %v342_v30 = vpop.xlane.xlu2 %341  ;;  %v345_v34 = vpop.xlane.xlu1 %344  ;;  %v352_v46 = vsub.f32 %v336_v2, %v348_v44 }
 0x208   :  { %v350_v31 = vsub.f32 %v334_v5, %v342_v30  ;;  %v351_v38 = vsub.f32 %v335_v3, %v345_v34 }
 0x209   :  { %v1430_v32 = vpop.eup %1429  ;;  %v359_v47 = vmul.f32 1.442695, %v352_v46 }
 0x20a   :  { %v355_v35 = vmul.f32 1.442695, %v350_v31  ;;  %1330 = vmatmul.msk.f32.gmra.mxu3 %vm206_vm6, %v1430_v32  ;;  %v1432_v36 = vpop.eup %1431  ;;  %v357_v39 = vmul.f32 1.442695, %v351_v38 }
 0x20b   :  { %1333 = vmatmul.msk.f32.vlgmr.msra.gmra.mxu2 %vm206_vm6, %v1432_v36  ;;  %v1434_v41 = vpop.eup %1433 }
 0x20c   :  { %1435 = vpow2.f32 %v355_v35 }
 0x20d   :  { %1437 = vpow2.f32 %v357_v39 }
 0x210   :  { %v218_v40 = vpop.xlane.xlu2 %217 }
 0x211   :  { %v222_v42 = vsub.f32 %v205_v14, %v218_v40 }
 0x212   :  { %v1436_v43 = vpop.eup %1435  ;;  %1331 = vmatmul.msk.f32.gmra.mxu3 %vm206_vm6, %v1434_v41 }
 0x213   :  { %v229_v45 = vmul.f32 1.442695, %v222_v42  ;;  %1334 = vmatmul.msk.f32.gmra.mxu2 %vm206_vm6, %v1436_v43  ;;  %v1438_v48 = vpop.eup %1437 }
 0x215   :  { %1439 = vpow2.f32 %v229_v45 }
 0x216   :  { %1441 = vpow2.f32 %v359_v47 }
 0x21b   :  { %v1440_v50 = vpop.eup %1439  ;;  %1335 = vmatmul.msk.f32.gmra.mxu2 %vm206_vm6, %v1438_v48 }
 0x21c   :  { %1332 = vmatmul.msk.f32.gmra.mxu3 %vm206_vm6, %v1440_v50  ;;  %v1442_v51 = vpop.eup %1441 }
 0x223   :  { %1336 = vmatmul.msk.f32.gmra.mxu2 %vm206_vm6, %v1442_v51  ;;  %v446_v51 = vld [vmem:[#allocation2 + $0x48] sm:$0x3] }
 0x285   :  { %v260_v53 = vpop.f32.mrf.mxu3 }
 0x286   :  { %1443 = vrcp.f32 %v260_v53 }
 0x28c   :  { %v1444_v54 = vpop.eup %1443 }
 0x28d   :  { %278 = vperm.xlu1 %1400, %v1444_v54   ;;  %v263_v55 = vpop.f32.mrf.mxu3 }
 0x28e   :  { %1445 = vrcp.f32 %v263_v55  ;;  %v390_v56 = vpop.f32.mrf.mxu2 }
 0x28f   :  { %1447 = vrcp.f32 %v390_v56 }
 0x294   :  { %v1446_v57 = vpop.eup %1445 }
 0x295   :  { %283 = vperm.xlu0 %1402, %v1446_v57   ;;  %v266_v58 = vpop.f32.mrf.mxu3  ;;  %v1448_v59 = vpop.eup %1447 }
 0x296   :  { %1449 = vrcp.f32 %v266_v58  ;;  %408 = vperm.xlu2 %1401, %v1448_v59   ;;  %v393_v60 = vpop.f32.mrf.mxu2 }
 0x297   :  { %1451 = vrcp.f32 %v393_v60 }
 0x29c   :  { %v1450_v62 = vpop.eup %1449 }
 0x29d   :  { %1404 = vset.pattern.permute.xlu0 %v1563_v21  ;;  %v1452_v63 = vpop.eup %1451 }
 0x29e   :  { %v396_v0 = vpop.f32.mrf.mxu2  ;;  %413 = vperm.xlu1 %1400, %v1452_v63   ;;  %288 = vperm.xlu2 %1401, %v1450_v62  }
 0x29f   :  { %v269_v1 = vpop.f32.mrf.mxu3  ;;  %1453 = vrcp.f32 %v396_v0 }
 0x2a0   :  { %1455 = vrcp.f32 %v269_v1 }
 0x2a5   :  { %v1454_v2 = vpop.eup %1453 }
 0x2a6   :  { %v1456_v3 = vpop.eup %1455  ;;  %418 = vperm.xlu1 %1400, %v1454_v2   ;;  %v399_v4 = vpop.f32.mrf.mxu2 }
 0x2a7   :  { %1457 = vrcp.f32 %v399_v4  ;;  %293 = vperm.xlu2 %1401, %v1456_v3  }
 0x2ad   :  { %v1458_v5 = vpop.eup %1457 }
 0x2ae   :  { %423 = vperm.xlu1 %1400, %v1458_v5  }
 0x2af   :  { %1403 = vset.pattern.permute.xlu2 %v1562_v11 }
 0x2b6   :  { %1405 = vset.pattern.permute.xlu1 %v1562_v11 }
 0x2f0   :  { %v409_v8 = vpop.permute.xlu2 %408 }
 0x2f1   :  { %v426_v12 = vmul.f32 %v409_v8, %v390_v56 }
 0x2f8   :  { %v289_v24 = vpop.permute.xlu2 %288 }
 0x2f9   :  { %v298_v28 = vmul.f32 %v289_v24, %v266_v58 }
 0x2ff   :  { %v279_v10 = vpop.permute.xlu1 %278 }
 0x300   :  { %v296_v13 = vmul.f32 %v279_v10, %v260_v53 }
 0x301   :  { %v294_v32 = vpop.permute.xlu2 %293 }
 0x302   :  { %v431_v14 = vsel %vm430_vm13, %v296_v13, %v426_v12  ;;  %v299_v36 = vmul.f32 %v294_v32, %v269_v1 }
 0x303   :  { %v436_v15 = vadd.f32 %v1424_v9, %v431_v14 }
 0x305   :  { %v440_v16 = vmax.f32 %v436_v15, 0.0 }
 0x307   :  { %1338 = vmatmul.msk.f32.vlgmr.msra.gmra.mxu1 %vm92_vm3, %v440_v16  ;;  %v284_v18 = vpop.permute.xlu0 %283 }
 0x308   :  { %v297_v20 = vmul.f32 %v284_v18, %v263_v55 }
 0x310   :  { %v414_v19 = vpop.permute.xlu1 %413 }
 0x311   :  { %v427_v22 = vmul.f32 %v414_v19, %v393_v60 }
 0x313   :  { %v432_v23 = vsel %vm430_vm13, %v297_v20, %v427_v22 }
 0x314   :  { %v437_v25 = vadd.f32 %v1424_v9, %v432_v23 }
 0x316   :  { %v441_v27 = vmax.f32 %v437_v25, 0.0 }
 0x318   :  { %v419_v26 = vpop.permute.xlu1 %418  ;;  %1339 = vmatmul.msk.f32.gmra.mxu1 %vm92_vm3, %v441_v27 }
 0x319   :  { %v428_v29 = vmul.f32 %v419_v26, %v396_v0 }
 0x31b   :  { %v433_v30 = vsel %vm430_vm13, %v298_v28, %v428_v29 }
 0x31c   :  { %v438_v31 = vadd.f32 %v1424_v9, %v433_v30 }
 0x31e   :  { %v442_v34 = vmax.f32 %v438_v31, 0.0 }
 0x320   :  { %v424_v35 = vpop.permute.xlu1 %423  ;;  %1340 = vmatmul.msk.f32.gmra.mxu1 %vm92_vm3, %v442_v34 }
 0x321   :  { %v429_v38 = vmul.f32 %v424_v35, %v399_v4 }
 0x323   :  { %v434_v39 = vsel %vm430_vm13, %v299_v36, %v429_v38 }
 0x324   :  { %v439_v40 = vadd.f32 %v1424_v9, %v434_v39 }
 0x326   :  { %v443_v41 = vmax.f32 %v439_v40, 0.0 }
 0x328   :  { %1341 = vmatmul.msk.f32.gmra.mxu1 %vm92_vm3, %v443_v41 }
 0x384   :  { %v481_v42 = vpop.f32.mrf.mxu1 }
 0x385   :  { %1343 = vmatmul.msk.f32.vlgmr.msrb.gmra.mxu0 %vm493_vm15, %v481_v42  ;;  %v562_v50 = vsel %vm493_vm15, %v481_v42, 1.0 }
 0x395   :  { %v484_v43 = vpop.f32.mrf.mxu1 }
 0x396   :  { %1344 = vmatmul.msk.f32.gmra.mxu0 %vm493_vm15, %v484_v43  ;;  %v563_v48 = vsel %vm493_vm15, %v484_v43, 1.0 }
 0x39d   :  { %v487_v44 = vpop.f32.mrf.mxu1 }
 0x39e   :  { %1345 = vmatmul.msk.f32.gmra.mxu0 %vm493_vm15, %v487_v44  ;;  %v564_v47 = vsel %vm493_vm15, %v487_v44, 1.0 }
 0x3a5   :  { %v490_v45 = vpop.f32.mrf.mxu1 }
 0x3a6   :  { %1346 = vmatmul.msk.f32.gmra.mxu0 %vm493_vm15, %v490_v45  ;;  %1347 = vmatpush.xpose.msk.msrb.mxu3 %vm493_vm15, %v490_v45  ;;  %v565_v46 = vsel %vm493_vm15, %v490_v45, 1.0 }
 0x3a7   :  { %785 = vmatpush.msrb.mxu2 %v565_v46 }
 0x3a9   :  { %786 = vmatpush.msrb.mxu2 %v564_v47 }
 0x3aa   :  { %1348 = vmatpush.xpose.msk.msrb.mxu3 %vm493_vm15, %v487_v44 }
 0x3ab   :  { %787 = vmatpush.msrb.mxu2 %v563_v48 }
 0x3ad   :  { %788 = vmatpush.msrb.mxu2 %v562_v50 }
 0x3ae   :  { %1349 = vmatpush.xpose.msk.msrb.mxu3 %vm493_vm15, %v484_v43 }
 0x3b2   :  { %1350 = vmatpush.xpose.msk.msrb.mxu3 %vm493_vm15, %v481_v42 }
 0x3b5   :  { %1351 = vmatmul.msk.f32.vlgmr.msrb.gmra.mxu3 %vm493_vm15, %v446_v51 }
 0x3b6   :  { %655 = vmatpush.msra.mxu3 %v565_v46 }
 0x3b8   :  { %656 = vmatpush.msra.mxu3 %v564_v47 }
 0x3ba   :  { %657 = vmatpush.msra.mxu3 %v563_v48 }
 0x3bc   :  { %658 = vmatpush.msra.mxu3 %v562_v50 }
 0x402   :  { %v527_v52 = vpop.f32.mrf.mxu0 }
 0x403   :  { %701 = vperm.xlu0 %1404, %v527_v52   ;;  %568 = vperm.xlu2 %1403, %v527_v52  }
 0x40b   :  { %1406 = vset.pattern.permute.xlu2 %v1563_v21  ;;  %1407 = vset.pattern.permute.xlu0 %v1562_v11 }
 0x413   :  { %v530_v53 = vpop.f32.mrf.mxu0 }
 0x414   :  { %705 = vperm.xlu2 %1406, %v530_v53   ;;  %573 = vperm.xlu1 %1405, %v530_v53  }
 0x41b   :  { %v533_v54 = vpop.f32.mrf.mxu0 }
 0x41c   :  { %709 = vperm.xlu2 %1406, %v533_v54   ;;  %578 = vperm.xlu1 %1405, %v533_v54  }
 0x423   :  { %v536_v55 = vpop.f32.mrf.mxu0 }
 0x424   :  { %1408 = vset.pattern.permute.xlu1 %v1563_v21  ;;  %583 = vperm.xlu0 %1407, %v536_v55  }
 0x425   :  { %713 = vperm.xlu1 %1408, %v536_v55  }
 0x438   :  { %v559_v56 = vpop.f32.mrf.mxu3 }
 0x439   :  { %v586_v57 = vperm.slane %v559_v56, 0  ;;  %v716_v1 = vperm.slane %v559_v56, 1 }
 0x45d   :  { %v569_v58 = vpop.permute.xlu2 %568 }
 0x45e   :  { %v587_v59 = vadd.f32 %v586_v57, %v569_v58 }
 0x460   :  { %vm591_vm0 = vcmp.gt.f32.partialorder %v587_v59, 0.0  ;;  %v595_v60 = vmul.f32 0.2, %v587_v59 }
 0x462   :  { %v599_v62 = vsel %vm591_vm0, %v587_v59, %v595_v60  ;;  %vm1295_vm0 = vcmask 24576  }
 0x463   :  { %v603_v63 = vadd.f32 %v599_v62, %v1631_v33 }
 0x465   :  { %v607_v0 = vsel %vm206_vm6, %v603_v63, -inf }
 0x466   :  { %608 = vmax.xlane.f32.xlu2 %v607_v0 }
 0x46e   :  { %v706_v2 = vpop.permute.xlu2 %705 }
 0x46f   :  { %v718_v3 = vadd.f32 %v716_v1, %v706_v2 }
 0x471   :  { %vm722_vm2 = vcmp.gt.f32.partialorder %v718_v3, 0.0  ;;  %v726_v4 = vmul.f32 0.2, %v718_v3 }
 0x473   :  { %v730_v5 = vsel %vm722_vm2, %v718_v3, %v726_v4 }
 0x474   :  { %v734_v7 = vadd.f32 %v730_v5, %v1647_v49 }
 0x475   :  { %v702_v6 = vpop.permute.xlu0 %701 }
 0x476   :  { %v717_v8 = vadd.f32 %v716_v1, %v702_v6  ;;  %v710_v9 = vpop.permute.xlu2 %709  ;;  %v740_v10 = vsel %vm206_vm6, %v734_v7, -inf }
 0x477   :  { %v719_v13 = vadd.f32 %v716_v1, %v710_v9  ;;  %741 = vmax.xlane.f32.xlu2 %v740_v10 }
 0x478   :  { %vm721_vm3 = vcmp.gt.f32.partialorder %v717_v8, 0.0  ;;  %v725_v12 = vmul.f32 0.2, %v717_v8 }
 0x479   :  { %vm723_vm4 = vcmp.gt.f32.partialorder %v719_v13, 0.0  ;;  %v727_v14 = vmul.f32 0.2, %v719_v13 }
 0x47a   :  { %v729_v15 = vsel %vm721_vm3, %v717_v8, %v725_v12 }
 0x47b   :  { %v733_v16 = vadd.f32 %v729_v15, %v1631_v33  ;;  %v731_v17 = vsel %vm723_vm4, %v719_v13, %v727_v14 }
 0x47c   :  { %v735_v19 = vadd.f32 %v731_v17, %v1637_v37 }
 0x47d   :  { %v737_v18 = vsel %vm206_vm6, %v733_v16, -inf }
 0x47e   :  { %738 = vmax.xlane.f32.xlu1 %v737_v18  ;;  %v743_v20 = vsel %vm206_vm6, %v735_v19, -inf }
 0x47f   :  { %744 = vmax.xlane.f32.xlu2 %v743_v20 }
 0x486   :  { %v574_v22 = vpop.permute.xlu1 %573 }
 0x487   :  { %v588_v23 = vadd.f32 %v586_v57, %v574_v22 }
 0x489   :  { %vm592_vm5 = vcmp.gt.f32.partialorder %v588_v23, 0.0  ;;  %v596_v24 = vmul.f32 0.2, %v588_v23 }
 0x48b   :  { %v600_v25 = vsel %vm592_vm5, %v588_v23, %v596_v24 }
 0x48c   :  { %v604_v27 = vadd.f32 %v600_v25, %v1647_v49 }
 0x48e   :  { %v579_v26 = vpop.permute.xlu1 %578  ;;  %v610_v28 = vsel %vm206_vm6, %v604_v27, -inf }
 0x48f   :  { %v589_v29 = vadd.f32 %v586_v57, %v579_v26  ;;  %611 = vmax.xlane.f32.xlu0 %v610_v28 }
 0x491   :  { %vm593_vm7 = vcmp.gt.f32.partialorder %v589_v29, 0.0  ;;  %v597_v30 = vmul.f32 0.2, %v589_v29 }
 0x493   :  { %v601_v31 = vsel %vm593_vm7, %v589_v29, %v597_v30 }
 0x494   :  { %v605_v32 = vadd.f32 %v601_v31, %v1637_v37 }
 0x496   :  { %v584_v34 = vpop.permute.xlu0 %583  ;;  %v613_v35 = vsel %vm206_vm6, %v605_v32, -inf }
 0x497   :  { %v590_v36 = vadd.f32 %v586_v57, %v584_v34  ;;  %v714_v38 = vpop.permute.xlu1 %713  ;;  %614 = vmax.xlane.f32.xlu1 %v613_v35 }
 0x498   :  { %v720_v39 = vadd.f32 %v716_v1, %v714_v38 }
 0x499   :  { %vm594_vm8 = vcmp.gt.f32.partialorder %v590_v36, 0.0  ;;  %v598_v40 = vmul.f32 0.2, %v590_v36 }
 0x49a   :  { %vm724_vm9 = vcmp.gt.f32.partialorder %v720_v39, 0.0  ;;  %v728_v41 = vmul.f32 0.2, %v720_v39 }
 0x49b   :  { %v602_v42 = vsel %vm594_vm8, %v590_v36, %v598_v40 }
 0x49c   :  { %v606_v43 = vadd.f32 %v602_v42, %v1658_v61  ;;  %v732_v44 = vsel %vm724_vm9, %v720_v39, %v728_v41  ;;  %v844_v39 = vld [vmem:[#allocation2 + $0x60] sm:$0xf]  ;;  %v1425_v41 = vld [vmem:[#allocation2 + $0x58] ss:$0 sm:$0xff] }
 0x49d   :  { %v736_v45 = vadd.f32 %v732_v44, %v1658_v61  ;;  %1360 = vmatpush.msk.msrb.mxu1 %vm506_vm14, %v844_v39  ;;  %vm1271_vm14 = vcmask 1046528  }
 0x49e   :  { %v616_v46 = vsel %vm206_vm6, %v606_v43, -inf }
 0x49f   :  { %617 = vmax.xlane.f32.xlu0 %v616_v46  ;;  %v746_v47 = vsel %vm206_vm6, %v736_v45, -inf }
 0x4a0   :  { %747 = vmax.xlane.f32.xlu1 %v746_v47 }
 0x4d9   :  { %v609_v48 = vpop.xlane.xlu2 %608 }
 0x4da   :  { %v619_v50 = vsub.f32 %v603_v63, %v609_v48  ;;  %v846_v48 = vld [vmem:[#allocation2 + $0x70] sm:$0x3] }
 0x4db   :  { %1365 = vmatpush.msk.msra.mxu0 %vm105_vm1, %v846_v48 }
 0x4dc   :  { %v623_v51 = vmul.f32 1.442695, %v619_v50 }
 0x4de   :  { %1459 = vpow2.f32 %v623_v51 }
 0x4e4   :  { %v1460_v52 = vpop.eup %1459 }
 0x4e5   :  { %1352 = vmatmul.msk.f32.vlgmr.msra.gmra.mxu3 %vm206_vm6, %v1460_v52 }
 0x4ea   :  { %v742_v53 = vpop.xlane.xlu2 %741 }
 0x4eb   :  { %v750_v57 = vsub.f32 %v734_v7, %v742_v53 }
 0x4ed   :  { %v755_v58 = vmul.f32 1.442695, %v750_v57 }
 0x4f1   :  { %v739_v54 = vpop.xlane.xlu1 %738 }
 0x4f2   :  { %v749_v55 = vsub.f32 %v733_v16, %v739_v54  ;;  %v745_v59 = vpop.xlane.xlu2 %744 }
 0x4f3   :  { %v751_v62 = vsub.f32 %v735_v19, %v745_v59  ;;  %v1565_v19 = vmov 4  }
 0x4f4   :  { %v753_v56 = vmul.f32 1.442695, %v749_v55  ;;  %1409 = vset.pattern.permute.xlu2 %v1565_v19  ;;  %1410 = vset.pattern.permute.xlu0 %v1565_v19 }
 0x4f5   :  { %v757_v0 = vmul.f32 1.442695, %v751_v62  ;;  %1411 = vset.pattern.permute.xlu1 %v1565_v19 }
 0x4f6   :  { %1461 = vpow2.f32 %v753_v56 }
 0x4f7   :  { %1463 = vpow2.f32 %v755_v58 }
 0x4f8   :  { %1465 = vpow2.f32 %v757_v0 }
 0x4fc   :  { %v1462_v60 = vpop.eup %1461 }
 0x4fd   :  { %1356 = vmatmul.msk.f32.vlgmr.msrb.gmra.mxu2 %vm206_vm6, %v1462_v60  ;;  %v1464_v1 = vpop.eup %1463 }
 0x4fe   :  { %v1466_v5 = vpop.eup %1465 }
 0x502   :  { %v612_v63 = vpop.xlane.xlu0 %611 }
 0x503   :  { %v620_v2 = vsub.f32 %v604_v27, %v612_v63 }
 0x505   :  { %1357 = vmatmul.msk.f32.gmra.mxu2 %vm206_vm6, %v1464_v1  ;;  %v625_v3 = vmul.f32 1.442695, %v620_v2 }
 0x507   :  { %1467 = vpow2.f32 %v625_v3 }
 0x50a   :  { %v615_v4 = vpop.xlane.xlu1 %614 }
 0x50b   :  { %v621_v6 = vsub.f32 %v605_v32, %v615_v4 }
 0x50d   :  { %1358 = vmatmul.msk.f32.gmra.mxu2 %vm206_vm6, %v1466_v5  ;;  %v1468_v7 = vpop.eup %1467  ;;  %v627_v8 = vmul.f32 1.442695, %v621_v6 }
 0x50e   :  { %1353 = vmatmul.msk.f32.gmra.mxu3 %vm206_vm6, %v1468_v7 }
 0x50f   :  { %1469 = vpow2.f32 %v627_v8 }
 0x512   :  { %v618_v9 = vpop.xlane.xlu0 %617 }
 0x513   :  { %v622_v10 = vsub.f32 %v606_v43, %v618_v9  ;;  %v748_v12 = vpop.xlane.xlu1 %747 }
 0x514   :  { %v752_v13 = vsub.f32 %v736_v45, %v748_v12 }
 0x515   :  { %v1470_v14 = vpop.eup %1469  ;;  %v629_v15 = vmul.f32 1.442695, %v622_v10 }
 0x516   :  { %v759_v16 = vmul.f32 1.442695, %v752_v13  ;;  %1354 = vmatmul.msk.f32.gmra.mxu3 %vm206_vm6, %v1470_v14 }
 0x517   :  { %1471 = vpow2.f32 %v629_v15 }
 0x518   :  { %1473 = vpow2.f32 %v759_v16 }
 0x51d   :  { %v1472_v17 = vpop.eup %1471 }
 0x51e   :  { %v1474_v18 = vpop.eup %1473  ;;  %1355 = vmatmul.msk.f32.gmra.mxu3 %vm206_vm6, %v1472_v17  ;;  %v845_v17 = vld [vmem:[#allocation2 + $0x68] sm:$0x1] }
 0x51f   :  { %1359 = vmatmul.msk.f32.gmra.mxu2 %vm206_vm6, %v1474_v18 }
 0x568   :  { %v660_v20 = vpop.f32.mrf.mxu3 }
 0x569   :  { %1475 = vrcp.f32 %v660_v20 }
 0x56f   :  { %v1476_v22 = vpop.eup %1475 }
 0x570   :  { %678 = vperm.xlu2 %1409, %v1476_v22  }
 0x580   :  { %v790_v23 = vpop.f32.mrf.mxu2 }
 0x581   :  { %1477 = vrcp.f32 %v790_v23 }
 0x587   :  { %v1478_v24 = vpop.eup %1477 }
 0x588   :  { %v793_v25 = vpop.f32.mrf.mxu2  ;;  %808 = vperm.xlu0 %1410, %v1478_v24  }
 0x589   :  { %1479 = vrcp.f32 %v793_v25 }
 0x58f   :  { %v1480_v27 = vpop.eup %1479 }
 0x590   :  { %813 = vperm.xlu2 %1409, %v1480_v27   ;;  %v796_v26 = vpop.f32.mrf.mxu2  ;;  %1412 = vset.pattern.permute.xlu0 %v1562_v11 }
 0x591   :  { %1481 = vrcp.f32 %v796_v26  ;;  %v663_v28 = vpop.f32.mrf.mxu3 }
 0x592   :  { %1483 = vrcp.f32 %v663_v28 }
 0x597   :  { %v1482_v29 = vpop.eup %1481 }
 0x598   :  { %818 = vperm.xlu2 %1409, %v1482_v29   ;;  %v1484_v30 = vpop.eup %1483 }
 0x599   :  { %683 = vperm.xlu1 %1411, %v1484_v30   ;;  %v666_v31 = vpop.f32.mrf.mxu3 }
 0x59a   :  { %1485 = vrcp.f32 %v666_v31 }
 0x5a0   :  { %v1486_v32 = vpop.eup %1485 }
 0x5a1   :  { %688 = vperm.xlu1 %1411, %v1486_v32   ;;  %v669_v34 = vpop.f32.mrf.mxu3 }
 0x5a2   :  { %1487 = vrcp.f32 %v669_v34  ;;  %v799_v35 = vpop.f32.mrf.mxu2 }
 0x5a3   :  { %1489 = vrcp.f32 %v799_v35 }
 0x5a8   :  { %v1488_v36 = vpop.eup %1487 }
 0x5a9   :  { %v1490_v38 = vpop.eup %1489  ;;  %693 = vperm.xlu1 %1411, %v1488_v36  }
 0x5aa   :  { %823 = vperm.xlu2 %1409, %v1490_v38  }
 0x5b1   :  { %1413 = vset.pattern.permute.xlu1 %v1562_v11 }
 0x5b2   :  { %1414 = vset.pattern.permute.xlu2 %v1562_v11 }
 0x5ca   :  { %v679_v40 = vpop.permute.xlu2 %678 }
 0x5cb   :  { %v696_v43 = vmul.f32 %v679_v40, %v660_v20 }
 0x5ea   :  { %v814_v50 = vpop.permute.xlu2 %813 }
 0x5eb   :  { %v827_v52 = vmul.f32 %v814_v50, %v793_v25 }
 0x5f2   :  { %v819_v56 = vpop.permute.xlu2 %818 }
 0x5f3   :  { %v828_v59 = vmul.f32 %v819_v56, %v796_v26 }
 0x5fa   :  { %v809_v42 = vpop.permute.xlu0 %808 }
 0x5fb   :  { %v826_v44 = vmul.f32 %v809_v42, %v790_v23 }
 0x5fd   :  { %v831_v45 = vsel %vm830_vm10, %v696_v43, %v826_v44 }
 0x5fe   :  { %v836_v46 = vadd.f32 %v1425_v41, %v831_v45 }
 0x600   :  { %v840_v47 = vmax.f32 %v836_v46, 0.0 }
 0x602   :  { %1361 = vmatmul.msk.f32.vlgmr.msrb.gmra.mxu1 %vm493_vm15, %v840_v47 }
 0x604   :  { %v824_v63 = vpop.permute.xlu2 %823 }
 0x605   :  { %v829_v3 = vmul.f32 %v824_v63, %v799_v35 }
 0x60b   :  { %v684_v51 = vpop.permute.xlu1 %683 }
 0x60c   :  { %v697_v53 = vmul.f32 %v684_v51, %v663_v28 }
 0x60e   :  { %v832_v54 = vsel %vm830_vm10, %v697_v53, %v827_v52 }
 0x60f   :  { %v837_v55 = vadd.f32 %v1425_v41, %v832_v54 }
 0x611   :  { %v841_v57 = vmax.f32 %v837_v55, 0.0 }
 0x613   :  { %v689_v58 = vpop.permute.xlu1 %688  ;;  %1362 = vmatmul.msk.f32.gmra.mxu1 %vm493_vm15, %v841_v57 }
 0x614   :  { %v698_v60 = vmul.f32 %v689_v58, %v666_v31 }
 0x616   :  { %v833_v62 = vsel %vm830_vm10, %v698_v60, %v828_v59 }
 0x617   :  { %v838_v0 = vadd.f32 %v1425_v41, %v833_v62 }
 0x619   :  { %v842_v1 = vmax.f32 %v838_v0, 0.0 }
 0x61b   :  { %v694_v2 = vpop.permute.xlu1 %693  ;;  %1363 = vmatmul.msk.f32.gmra.mxu1 %vm493_vm15, %v842_v1  ;;  %v1566_v1 = vmov 2  }
 0x61c   :  { %v699_v4 = vmul.f32 %v694_v2, %v669_v34 }
 0x61e   :  { %v834_v5 = vsel %vm830_vm10, %v699_v4, %v829_v3 }
 0x61f   :  { %v839_v6 = vadd.f32 %v1425_v41, %v834_v5 }
 0x621   :  { %v843_v7 = vmax.f32 %v839_v6, 0.0 }
 0x623   :  { %1364 = vmatmul.msk.f32.gmra.mxu1 %vm493_vm15, %v843_v7  ;;  %vm1267_vm15 = vcmask 56320  }
 0x67f   :  { %v880_v8 = vpop.f32.mrf.mxu1 }
 0x680   :  { %1366 = vmatmul.msk.f32.vlgmr.msra.gmra.mxu0 %vm830_vm10, %v880_v8  ;;  %v959_v16 = vsel %vm830_vm10, %v880_v8, 1.0 }
 0x690   :  { %v883_v9 = vpop.f32.mrf.mxu1 }
 0x691   :  { %1367 = vmatmul.msk.f32.gmra.mxu0 %vm830_vm10, %v883_v9  ;;  %v960_v15 = vsel %vm830_vm10, %v883_v9, 1.0 }
 0x698   :  { %v886_v10 = vpop.f32.mrf.mxu1 }
 0x699   :  { %1368 = vmatmul.msk.f32.gmra.mxu0 %vm830_vm10, %v886_v10  ;;  %v961_v14 = vsel %vm830_vm10, %v886_v10, 1.0 }
 0x6a0   :  { %v889_v12 = vpop.f32.mrf.mxu1 }
 0x6a1   :  { %v962_v13 = vsel %vm830_vm10, %v889_v12, 1.0  ;;  %1369 = vmatmul.msk.f32.gmra.mxu0 %vm830_vm10, %v889_v12  ;;  %1370 = vmatpush.xpose.msk.msrb.mxu3 %vm830_vm10, %v889_v12 }
 0x6a2   :  { %1052 = vmatpush.msra.mxu2 %v962_v13 }
 0x6a4   :  { %1053 = vmatpush.msra.mxu2 %v961_v14 }
 0x6a5   :  { %1371 = vmatpush.xpose.msk.msrb.mxu3 %vm830_vm10, %v886_v10  ;;  %v1426_v10 = vld [vmem:[#allocation2 + $0x78] ss:$0 sm:$0xff] }
 0x6a6   :  { %1054 = vmatpush.msra.mxu2 %v960_v15 }
 0x6a8   :  { %1055 = vmatpush.msra.mxu2 %v959_v16 }
 0x6a9   :  { %1372 = vmatpush.xpose.msk.msrb.mxu3 %vm830_vm10, %v883_v9 }
 0x6ad   :  { %1373 = vmatpush.xpose.msk.msrb.mxu3 %vm830_vm10, %v880_v8 }
 0x6b0   :  { %1374 = vmatmul.msk.f32.vlgmr.msrb.gmra.mxu3 %vm830_vm10, %v845_v17 }
 0x6fd   :  { %v924_v18 = vpop.f32.mrf.mxu0 }
 0x6fe   :  { %965 = vperm.xlu0 %1412, %v924_v18  }
 0x706   :  { %1415 = vset.pattern.permute.xlu0 %v1566_v1 }
 0x70e   :  { %v927_v19 = vpop.f32.mrf.mxu0 }
 0x70f   :  { %970 = vperm.xlu1 %1413, %v927_v19  }
 0x716   :  { %v930_v20 = vpop.f32.mrf.mxu0 }
 0x717   :  { %975 = vperm.xlu2 %1414, %v930_v20  }
 0x71e   :  { %v933_v22 = vpop.f32.mrf.mxu0 }
 0x71f   :  { %980 = vperm.xlu1 %1413, %v933_v22   ;;  %1417 = vset.pattern.permute.xlu2 %v1566_v1 }
 0x727   :  { %1416 = vset.pattern.permute.xlu1 %v1566_v1 }
 0x733   :  { %v956_v23 = vpop.f32.mrf.mxu3 }
 0x734   :  { %v983_v24 = vperm.slane %v956_v23, 0 }
 0x770   :  { %v966_v25 = vpop.permute.xlu0 %965 }
 0x771   :  { %v984_v27 = vadd.f32 %v983_v24, %v966_v25  ;;  %v976_v26 = vpop.permute.xlu2 %975 }
 0x772   :  { %v986_v29 = vadd.f32 %v983_v24, %v976_v26 }
 0x773   :  { %vm988_vm1 = vcmp.gt.f32.partialorder %v984_v27, 0.0  ;;  %v992_v28 = vmul.f32 0.2, %v984_v27 }
 0x774   :  { %vm990_vm11 = vcmp.gt.f32.partialorder %v986_v29, 0.0  ;;  %v994_v30 = vmul.f32 0.2, %v986_v29 }
 0x775   :  { %v996_v31 = vsel %vm988_vm1, %v984_v27, %v992_v28 }
 0x776   :  { %v1000_v32 = vadd.f32 %v996_v31, %v1631_v33  ;;  %v998_v34 = vsel %vm990_vm11, %v986_v29, %v994_v30  ;;  %v1163_v29 = vld [vmem:[#allocation2 + $0xc8] sm:$0x7f]  ;;  %v1229_v30 = vld [vmem:[#allocation2 + $0xd8] sm:$0x1]  ;;  %v1106_v31 = vld [vmem:[#allocation2 + $0x80] sm:$0xff] }
 0x777   :  { %v1002_v36 = vadd.f32 %v998_v34, %v1637_v37  ;;  %v1134_v34 = vld [vmem:[#allocation2 + $0xa0] sm:$0xff] }
 0x778   :  { %v1004_v35 = vsel %vm206_vm6, %v1000_v32, -inf }
 0x779   :  { %1005 = vmax.xlane.f32.xlu2 %v1004_v35  ;;  %v1010_v38 = vsel %vm206_vm6, %v1002_v36, -inf }
 0x77a   :  { %1011 = vmax.xlane.f32.xlu1 %v1010_v38 }
 0x781   :  { %v971_v39 = vpop.permute.xlu1 %970 }
 0x782   :  { %v985_v40 = vadd.f32 %v983_v24, %v971_v39 }
 0x784   :  { %vm989_vm12 = vcmp.gt.f32.partialorder %v985_v40, 0.0  ;;  %v993_v41 = vmul.f32 0.2, %v985_v40 }
 0x786   :  { %v997_v42 = vsel %vm989_vm12, %v985_v40, %v993_v41  ;;  %v1107_v40 = vld [vmem:[#allocation2 + $0x88] sm:$0xff] }
 0x787   :  { %v1001_v43 = vadd.f32 %v997_v42, %v1647_v49  ;;  %v1135_v41 = vld [vmem:[#allocation2 + $0xa8] sm:$0xff] }
 0x789   :  { %v1007_v44 = vsel %vm206_vm6, %v1001_v43, -inf }
 0x78a   :  { %1008 = vmax.xlane.f32.xlu0 %v1007_v44  ;;  %v1162_v44 = vld [vmem:[#allocation2 + $0xc0] sm:$0xf] }
 0x78b   :  { %1379 = vmatpush.xpose.msk.msra.mxu3 %vm206_vm6, %v1162_v44 }
 0x791   :  { %v981_v33 = vpop.permute.xlu1 %980 }
 0x792   :  { %v987_v45 = vadd.f32 %v983_v24, %v981_v33 }
 0x794   :  { %vm991_vm13 = vcmp.gt.f32.partialorder %v987_v45, 0.0  ;;  %v995_v46 = vmul.f32 0.2, %v987_v45 }
 0x796   :  { %v999_v47 = vsel %vm991_vm13, %v987_v45, %v995_v46 }
 0x797   :  { %v1003_v37 = vadd.f32 %v999_v47, %v1658_v61 }
 0x799   :  { %v1013_v48 = vsel %vm206_vm6, %v1003_v37, -inf }
 0x79a   :  { %1014 = vmax.xlane.f32.xlu2 %v1013_v48 }
 0x7ec   :  { %v1006_v50 = vpop.xlane.xlu2 %1005 }
 0x7ed   :  { %v1016_v51 = vsub.f32 %v1000_v32, %v1006_v50  ;;  %v1012_v55 = vpop.xlane.xlu1 %1011  ;;  %v1136_v50 = vld [vmem:[#allocation2 + $0xb0] sm:$0xff] }
 0x7ee   :  { %v1018_v57 = vsub.f32 %v1002_v36, %v1012_v55  ;;  %v1109_v55 = vld [vmem:[#allocation2 + $0x98] sm:$0xff] }
 0x7ef   :  { %v1020_v52 = vmul.f32 1.442695, %v1016_v51 }
 0x7f0   :  { %v1024_v58 = vmul.f32 1.442695, %v1018_v57 }
 0x7f1   :  { %1491 = vpow2.f32 %v1020_v52 }
 0x7f7   :  { %v1492_v53 = vpop.eup %1491 }
 0x7f8   :  { %1375 = vmatmul.msk.f32.vlgmr.msra.gmra.mxu2 %vm206_vm6, %v1492_v53 }
 0x7fd   :  { %v1009_v49 = vpop.xlane.xlu0 %1008 }
 0x7fe   :  { %v1017_v54 = vsub.f32 %v1001_v43, %v1009_v49  ;;  %v1228_v43 = vld [vmem:[#allocation2 + $0xd0] sm:$0x7f]  ;;  %v1137_v49 = vld [vmem:[#allocation2 + $0xb8] sm:$0xff] }
 0x800   :  { %v1022_v56 = vmul.f32 1.442695, %v1017_v54 }
 0x802   :  { %1493 = vpow2.f32 %v1022_v56 }
 0x803   :  { %1495 = vpow2.f32 %v1024_v58 }
 0x808   :  { %v1494_v59 = vpop.eup %1493 }
 0x809   :  { %1376 = vmatmul.msk.f32.gmra.mxu2 %vm206_vm6, %v1494_v59  ;;  %v1496_v62 = vpop.eup %1495 }
 0x80d   :  { %v1015_v61 = vpop.xlane.xlu2 %1014 }
 0x80e   :  { %v1019_v60 = vsub.f32 %v1003_v37, %v1015_v61  ;;  %v1108_v37 = vld [vmem:[#allocation2 + $0x90] sm:$0xff] }
 0x810   :  { %v1026_v0 = vmul.f32 1.442695, %v1019_v60 }
 0x811   :  { %1377 = vmatmul.msk.f32.gmra.mxu2 %vm206_vm6, %v1496_v62 }
 0x812   :  { %1497 = vpow2.f32 %v1026_v0 }
 0x818   :  { %v1498_v63 = vpop.eup %1497 }
 0x819   :  { %1378 = vmatmul.msk.f32.gmra.mxu2 %vm206_vm6, %v1498_v63 }
 0x87b   :  { %v1057_v2 = vpop.f32.mrf.mxu2 }
 0x87c   :  { %1499 = vrcp.f32 %v1057_v2 }
 0x882   :  { %v1500_v3 = vpop.eup %1499 }
 0x883   :  { %1075 = vperm.xlu0 %1415, %v1500_v3  }
 0x88b   :  { %1420 = vset.pattern.permute.xlu0 %v1563_v21 }
 0x88c   :  { %v1060_v4 = vpop.f32.mrf.mxu2 }
 0x88d   :  { %1501 = vrcp.f32 %v1060_v4 }
 0x893   :  { %v1502_v5 = vpop.eup %1501 }
 0x894   :  { %1080 = vperm.xlu1 %1416, %v1502_v5   ;;  %v1063_v6 = vpop.f32.mrf.mxu2 }
 0x895   :  { %1503 = vrcp.f32 %v1063_v6 }
 0x89b   :  { %v1504_v7 = vpop.eup %1503 }
 0x89c   :  { %1085 = vperm.xlu2 %1417, %v1504_v7   ;;  %v1066_v8 = vpop.f32.mrf.mxu2 }
 0x89d   :  { %1505 = vrcp.f32 %v1066_v8 }
 0x8a3   :  { %v1506_v9 = vpop.eup %1505 }
 0x8a4   :  { %1090 = vperm.xlu1 %1416, %v1506_v9   ;;  %1418 = vset.pattern.permute.xlu2 %v1562_v11 }
 0x8ac   :  { %1419 = vset.pattern.permute.xlu1 %v1563_v21 }
 0x8f5   :  { %v1076_v12 = vpop.permute.xlu0 %1075 }
 0x8f6   :  { %v1093_v13 = vmul.f32 %v1076_v12, %v1057_v2  ;;  %v1086_v15 = vpop.permute.xlu2 %1085 }
 0x8f7   :  { %v1095_v17 = vmul.f32 %v1086_v15, %v1063_v6 }
 0x8f8   :  { %v1098_v14 = vadd.f32 %v1426_v10, %v1093_v13 }
 0x8f9   :  { %v1100_v18 = vadd.f32 %v1426_v10, %v1095_v17 }
 0x8fa   :  { %v1102_v16 = vmax.f32 %v1098_v14, 0.0 }
 0x8fb   :  { %v1104_v19 = vmax.f32 %v1100_v18, 0.0 }
 0x8fc   :  { %1112 = vperm.xlu2 %1418, %v1102_v16   ;;  %1139 = vperm.xlu1 %1419, %v1102_v16  }
 0x904   :  { %1421 = vset.pattern.permute.xlu1 %v1562_v11 }
 0x905   :  { %1122 = vperm.xlu1 %1421, %v1104_v19  }
 0x906   :  { %v1081_v20 = vpop.permute.xlu1 %1080 }
 0x907   :  { %v1094_v22 = vmul.f32 %v1081_v20, %v1060_v4 }
 0x909   :  { %v1099_v23 = vadd.f32 %v1426_v10, %v1094_v22 }
 0x90b   :  { %v1103_v24 = vmax.f32 %v1099_v23, 0.0 }
 0x90d   :  { %1143 = vperm.xlu0 %1420, %v1103_v24   ;;  %1117 = vperm.xlu2 %1418, %v1103_v24  }
 0x915   :  { %1422 = vset.pattern.permute.xlu2 %v1563_v21 }
 0x916   :  { %1147 = vperm.xlu2 %1422, %v1104_v19   ;;  %v1091_v25 = vpop.permute.xlu1 %1090 }
 0x917   :  { %v1096_v27 = vmul.f32 %v1091_v25, %v1066_v8 }
 0x919   :  { %v1101_v26 = vadd.f32 %v1426_v10, %v1096_v27 }
 0x91b   :  { %v1105_v28 = vmax.f32 %v1101_v26, 0.0 }
 0x91d   :  { %1127 = vperm.xlu1 %1421, %v1105_v28  }
 0x91e   :  { %1151 = vperm.xlu2 %1422, %v1105_v28  }
 0x925   :  { %1166 = vperm.xlu1 %1421, %v1163_v29  }
 0x92d   :  { %1232 = vperm.xlu1 %1421, %v1229_v30  }
 0x944   :  { %1235 = vxpose.xlu2.b32.start.end [1/1] (short) (narrow) %v1228_v43, 8 }
 0x956   :  { %v1113_v32 = vpop.permute.xlu2 %1112 }
 0x957   :  { %v1130_v36 = vmul.f32 %v1113_v32, %v1106_v31 }
 0x967   :  { %v1118_v21 = vpop.permute.xlu2 %1117 }
 0x968   :  { %v1131_v33 = vmul.f32 %v1118_v21, %v1107_v40 }
 0x96e   :  { %v1140_v35 = vpop.permute.xlu1 %1139 }
 0x96f   :  { %v1154_v38 = vmul.f32 %v1140_v35, %v1134_v34 }
 0x970   :  { %v1148_v47 = vpop.permute.xlu2 %1147 }
 0x971   :  { %v1158_v39 = vadd.f32 %v1154_v38, %v1130_v36  ;;  %v1156_v52 = vmul.f32 %v1148_v47, %v1136_v50 }
 0x973   :  { %1169 = vxpose.xlu0.b32.start [1/4] (short) (narrow) %v1158_v39, 8 }
 0x977   :  { %v1123_v48 = vpop.permute.xlu1 %1122 }
 0x978   :  { %v1132_v51 = vmul.f32 %v1123_v48, %v1108_v37  ;;  %v1152_v54 = vpop.permute.xlu2 %1151 }
 0x979   :  { %v1157_v57 = vmul.f32 %v1152_v54, %v1137_v49 }
 0x97a   :  { %v1160_v53 = vadd.f32 %v1156_v52, %v1132_v51 }
 0x97f   :  { %v1144_v42 = vpop.permute.xlu0 %1143 }
 0x980   :  { %v1155_v45 = vmul.f32 %v1144_v42, %v1135_v41 }
 0x982   :  { %v1159_v46 = vadd.f32 %v1155_v45, %v1131_v33 }
 0x984   :  { %1170 = vxpose.xlu0.b32.cont [2/4] (short) (narrow) %v1159_v46, 8 }
 0x98c   :  { %1171 = vxpose.xlu0.b32.cont [3/4] (short) (narrow) %v1160_v53, 8 }
 0x98f   :  { %v1128_v56 = vpop.permute.xlu1 %1127 }
 0x990   :  { %v1133_v58 = vmul.f32 %v1128_v56, %v1109_v55 }
 0x992   :  { %v1161_v59 = vadd.f32 %v1157_v57, %v1133_v58 }
 0x994   :  { %1172 = vxpose.xlu0.b32.end [4/4] (short) (narrow) %v1161_v59, 8 }
 0x997   :  { %v1167_v60 = vpop.permute.xlu1 %1166 }
 0x99f   :  { %v1233_v2 = vpop.permute.xlu1 %1232 }
 0x9dd   :  { %v1251_v1 = vpop.trf.xlu2 }
 0x9fb   :  { %1423 = vset.pattern.permute.xlu0 %v1562_v11 }
 0xa20   :  { %v1185_v61 = vpop.trf.xlu0 }
 0xa21   :  { %1380 = vmatmul.msk.f32.vlgmr.msra.gmra.mxu3 %vm206_vm6, %v1185_v61 }
 0xaa4   :  { %v1224_v62 = vpop.f32.mrf.mxu3 }
 0xaa5   :  { %v1225_v0 = vadd.f32 %v1224_v62, %v1167_v60 }
 0xaa7   :  { %v1227_v63 = vmax.f32 %v1225_v0, 0.0 }
 0xaa9   :  { %1381 = vmatpush.msk.msrb.mxu3 %vm1271_vm14, %v1227_v63 }
 0xaaa   :  { %1382 = vmatmul.msk.f32.vlgmr.msrb.gmra.mxu3 %vm1267_vm15, %v1251_v1 }
 0xb2d   :  { %v1292_v11 = vpop.f32.mrf.mxu3 }
 0xb2e   :  { %v1293_v3 = vadd.f32 %v1292_v11, %v1233_v2 }
 0xb30   :  { %1296 = vst.msk [vmem:[#allocation5] sm:$0x1] %vm1295_vm0, %v1293_v3 }
 0xb31   :  { %1307 = dma.vmem_to_hbm [thread:$0]  %s1303_s6, 16, %s1305_s9, [#allocation4]  }
 0xb32   :  { %1557 = dma.done.wait [#allocation4], 16  }
 0xb33   :  { %1558 = vsyncadd [#allocation4], 4294967280 }
 0xb34   :  { %1312 = vsyncpa [#allocation3], 1 }
 0xb35   :  { %1313 = vsyncpa [#allocation4], 1 }

</bundles_post_ra>
